<compile_context>
chip_gen: v6e
topology: v6e:2x2x1
jax: 0.10.0
libtpu: 0.0.40
codegen_flags: <defaults>
</compile_context>

<pallas_src>
import jax
import jax.numpy as jnp
from jax.experimental import pallas as pl
from jax.experimental.pallas import tpu as pltpu


def _round_up(v: int, m: int) -> int:
    return ((v + m - 1) // m) * m


def _gap_box_head_kernel(x_ref, wt_ref, b_ref, o_ref, colmax_ref):
    # x_ref     : (TN, Cin, HW)     channels-first slab straight from NCHW
    # wt_ref    : (COUT_T, Cin)     1x1-conv weight tile (output-major)
    # b_ref     : (1, COUT_T)       bias tile (f32)
    # o_ref     : (TN, COUT_T)      pooled output rows for this (batch, cout) tile
    # colmax_ref: (COUT_T, TN) f32  per-image spatial-max columns (VMEM scratch)
    wt = wt_ref[...]
    tn = x_ref.shape[0]

    # One MXU matmul per image; its (COUT_T, HW) f32 result is consumed by the
    # lane-dense max and written straight into its scratch column, so only one
    # full-size intermediate needs to stay live at a time.
    for n in range(tn):                       # TN <= 8: tiny static unroll
        xn = x_ref[n]
        if xn.dtype != wt.dtype:              # optional in-kernel cast (mxu_dtype)
            xn = xn.astype(wt.dtype)
        y = jnp.dot(wt, xn, preferred_element_type=jnp.float32)   # (COUT_T, HW)
        colmax_ref[:, n:n + 1] = jnp.max(y, axis=-1, keepdims=True)

    # bias + ReLU hoisted after the spatial max (exact: monotone per channel).
    z = jnp.transpose(colmax_ref[...])                    # (TN, COUT_T), small
    o_ref[...] = jnp.maximum(z + b_ref[...], 0.0).astype(o_ref.dtype)


def gap_box_head_forward(x_nchw, w_oi, b, *, mxu_dtype=None, cout_tile=1024):
    """GAP_BOX_HEAD forward: max_pool_hw(relu(conv1x1(x))).

    x_nchw : (N, Cin, H, W)  input feature map, PyTorch NCHW layout (f32 or bf16;
                             bf16 inputs are consumed as-is, never re-cast in HBM).
    w_oi   : (Cout, Cin)     1x1-conv weight (PyTorch [Cout, Cin, 1, 1].squeeze()).
    b      : (Cout,)         conv bias.
    mxu_dtype: optional MXU operand dtype (e.g. jnp.bfloat16): the weight is cast
               once in the wrapper (small) and x is cast in-kernel after the DMA.
    returns (N, Cout) float32.
    """
    N, Cin, H, W = x_nchw.shape
    Cout = w_oi.shape[0]
    HW = H * W

    # Free reshape only (NCHW is contiguous) — no HBM transpose pass.
    x = x_nchw.reshape(N, Cin, HW)

    LANE, SUB = 128, 8

    # Cout padding + optional Cout tiling (bounds the resident weight tile and
    # the (COUT_T, HW) matmul intermediate at large representation_size).
    cout_tile = _round_up(cout_tile, LANE)
    Coutp = _round_up(Cout, LANE)
    if Coutp <= cout_tile:
        cout_t = Coutp
    else:
        cout_t = cout_tile
        Coutp = _round_up(Coutp, cout_tile)
    n_cout = Coutp // cout_t

    # Never cast x in the wrapper (extra full HBM read+write pass); only the
    # (small) weight changes dtype here.
    wt_dtype = jnp.dtype(mxu_dtype) if mxu_dtype is not None else x.dtype

    wt = jnp.pad(w_oi, ((0, Coutp - Cout), (0, 0))).astype(wt_dtype)  # (Coutp, Cin)
    bp = jnp.pad(b.astype(jnp.float32), (0, Coutp - Cout)).reshape(1, Coutp)

    # Batch tiling: 8 rows/step keeps the output block sublane-aligned (unmasked
    # stores); a non-multiple-of-8 N gets a masked partial final block instead of
    # collapsing to a single giant TN=N step.
    # TODO(synk): on v7x (2 TCs) very small N (e.g. 16) leaves only ~1 step per
    #             core; TN=4/2 would pipeline better at the cost of sublane-masked
    #             output stores.
    TN = 8 if N >= 8 else N
    n_batch = pl.cdiv(N, TN)
    grid = (n_cout, n_batch)   # batch is the fast axis -> weight tile stays
                               # resident across the whole batch sweep

    # ---- explicit VMEM budget from PADDED tile sizes (+30% headroom) ----
    HWp = _round_up(HW, LANE)
    vmem = 0
    vmem += 2 * TN * _round_up(Cin, SUB) * HWp * x.dtype.itemsize   # x block (double-buffered)
    vmem += 1 * cout_t * _round_up(Cin, LANE) * wt.dtype.itemsize   # weight tile (single-buffered)
    vmem += 1 * SUB * cout_t * 4                                    # bias tile (single-buffered)
    vmem += 2 * _round_up(TN, SUB) * cout_t * 4                     # output block (double-buffered)
    vmem += cout_t * _round_up(TN, LANE) * 4                        # colmax scratch
    vmem += 2 * cout_t * HWp * 4                                    # live f32 matmul intermediates
    vmem_limit = int(vmem * 1.3)
    vmem_limit = max(vmem_limit, 32 * 1024 * 1024)   # >= v6e/v7x scoped default
    vmem_limit = min(vmem_limit, 64 * 1024 * 1024)   # <= v7x physical VMEM

    cost = pl.CostEstimate(
        flops=2 * N * Cout * Cin * HW,
        transcendentals=0,
        bytes_accessed=(int(x.size) * x.dtype.itemsize
                        + int(wt.size) * wt.dtype.itemsize
                        + int(bp.size) * 4
                        + N * Coutp * 4),
    )

    out = pl.pallas_call(
        _gap_box_head_kernel,
        out_shape=jax.ShapeDtypeStruct((N, Coutp), jnp.float32),
        grid_spec=pltpu.PrefetchScalarGridSpec(
            num_scalar_prefetch=0,
            grid=grid,
            in_specs=[
                # x: streamed over the batch axis, constant over the cout axis
                # (re-read only once per Cout tile; n_cout is 1-2 in practice).
                pl.BlockSpec((TN, Cin, HW), lambda c, n: (n, 0, 0)),
                # weight / bias tiles are resident across the batch sweep ->
                # single-buffered: no second VMEM copy.
                pl.BlockSpec((cout_t, Cin), lambda c, n: (c, 0),
                             pipeline_mode=pl.Buffered(1)),
                pl.BlockSpec((1, cout_t), lambda c, n: (0, c),
                             pipeline_mode=pl.Buffered(1)),
            ],
            out_specs=pl.BlockSpec((TN, cout_t), lambda c, n: (n, c)),
            scratch_shapes=[pltpu.VMEM((cout_t, TN), jnp.float32)],
        ),
        compiler_params=pltpu.CompilerParams(
            dimension_semantics=("parallel", "parallel"),
            vmem_limit_bytes=vmem_limit,
        ),
        cost_estimate=cost,
    )(x, wt, bp)

    # TODO(synk): PyTorch's .squeeze() also drops the batch dim when N == 1; this
    #             wrapper always returns (N, Cout).
    # TODO(synk): for full-feature-map inputs (very large HW), add a trailing
    #             "arbitrary" grid axis over HW tiles with a -inf-initialized
    #             VMEM max accumulator (exact: max is associative).
    return out[:, :Cout]


if __name__ == "__main__":
    # RoI-head-like small shapes: N RoIs, Cin channels, HxW crop,
    # representation_size = Cout.
    N, Cin, H, W = 16, 16, 16, 16
    Cout = 32

    key = jax.random.PRNGKey(0)
    kx, kw, kb, kx2 = jax.random.split(key, 4)
    x = jax.random.normal(kx, (N, Cin, H, W), dtype=jnp.float32)
    # Deterministic "feat_head" parameters: 1x1 conv weight in PyTorch (Cout, Cin) layout.
    w_oi = (jax.random.normal(kw, (Cout, Cin), dtype=jnp.float32)
            * (1.0 / jnp.sqrt(jnp.float32(Cin))))
    b = jax.random.normal(kb, (Cout,), dtype=jnp.float32) * 0.01

    def reference(xf, wf, bf):
        # Original op order (conv + bias + ReLU, then global max) — also validates
        # the in-kernel hoist of bias/ReLU past the max.
        n_, c_, h_, w_ = xf.shape
        xe = jnp.transpose(xf, (0, 2, 3, 1)).reshape(n_, h_ * w_, c_)
        return jnp.max(jnp.maximum(xe @ wf.T + bf[None, None, :], 0.0), axis=1)

    # 1) f32 path, N a multiple of 8 (unmasked 8 x Coutp output blocks).
    out = jax.block_until_ready(gap_box_head_forward(x, w_oi, b))
    ref = reference(x, w_oi, b)
    assert out.shape == (N, Cout)
    assert jnp.allclose(out, ref, atol=1e-4, rtol=1e-4), "f32 mismatch vs reference"

    # 2) masked partial final batch block (N % 8 != 0) + in-kernel bf16 MXU cast
    #    (x stays f32 in HBM; compared against a bf16-cast reference).
    N2 = 13
    x2 = jax.random.normal(kx2, (N2, Cin, H, W), dtype=jnp.float32)
    out2 = jax.block_until_ready(
        gap_box_head_forward(x2, w_oi, b, mxu_dtype=jnp.bfloat16))
    ref2 = reference(x2.astype(jnp.bfloat16).astype(jnp.float32),
                     w_oi.astype(jnp.bfloat16).astype(jnp.float32), b)
    assert out2.shape == (N2, Cout)
    assert jnp.allclose(out2, ref2, atol=2e-3, rtol=2e-3), \
        "bf16-MXU mismatch vs bf16 reference"

    # 3) bf16 producer pass-through: x arrives already in bf16, no wrapper cast.
    xb = x.astype(jnp.bfloat16)
    out3 = jax.block_until_ready(gap_box_head_forward(xb, w_oi, b))
    ref3 = reference(x.astype(jnp.bfloat16).astype(jnp.float32),
                     w_oi.astype(jnp.bfloat16).astype(jnp.float32), b)
    assert out3.shape == (N, Cout)
    assert jnp.allclose(out3, ref3, atol=2e-3, rtol=2e-3), \
        "bf16 pass-through mismatch vs bf16 reference"

    print("KERNEL_OK")
</pallas_src>

<mosaic_0001>
module attributes {stable_mosaic.version = 11 : i64} {
  func.func @_gap_box_head_kernel(%arg0: i32, %arg1: i32, %arg2: memref<8x16x256xf32, #tpu.memory_space<vmem>>, %arg3: memref<128x16xf32, #tpu.memory_space<vmem>>, %arg4: memref<1x128xf32, #tpu.memory_space<vmem>>, %arg5: memref<8x128xf32, #tpu.memory_space<vmem>>, %arg6: memref<128x8xf32, #tpu.memory_space<vmem>>) attributes {dimension_semantics = [#tpu.dimension_semantics<parallel>, #tpu.dimension_semantics<parallel>], iteration_bounds = array<i64: 1, 2>, scalar_prefetch = 0 : i64, scratch_operands = 1 : i64, tpu.core_type = #tpu.core_type<tc>, window_params = [{transform_indices = @transform_0, window_bounds = array<i64: 8, 16, 256>}, {pipeline_mode = #tpu.pipeline_mode<synchronous>, transform_indices = @transform_1, window_bounds = array<i64: 128, 16>}, {pipeline_mode = #tpu.pipeline_mode<synchronous>, transform_indices = @transform_2, window_bounds = array<i64: 1, 128>}, {transform_indices = @transform_3, window_bounds = array<i64: 8, 128>}]} {
    %c0 = arith.constant 0 : index
    %c0_0 = arith.constant 0 : index
    %0 = vector.load %arg3[%c0, %c0_0] : memref<128x16xf32, #tpu.memory_space<vmem>>, vector<128x16xf32>
    %c0_1 = arith.constant 0 : index
    %c0_2 = arith.constant 0 : index
    %c0_3 = arith.constant 0 : index
    %1 = vector.load %arg2[%c0_1, %c0_2, %c0_3] : memref<8x16x256xf32, #tpu.memory_space<vmem>>, vector<1x16x256xf32>
    %2 = vector.shape_cast %1 : vector<1x16x256xf32> to vector<16x256xf32>
    %cst = arith.constant dense<0.000000e+00> : vector<128x256xf32>
    %3 = tpu.matmul %0, %2, %cst {dimension_numbers = #tpu.dot_dimension_numbers<[1], [0], [0], [1], [0, 0, 1, 1], [], []>} : vector<128x16xf32>, vector<16x256xf32>, vector<128x256xf32> -> vector<128x256xf32>
    %cst_4 = arith.constant dense<0xFF800000> : vector<128xf32>
    %4 = vector.multi_reduction <maximumf>, %3, %cst_4 [1] : vector<128x256xf32> to vector<128xf32>
    %5 = vector.shape_cast %4 : vector<128xf32> to vector<128x1xf32>
    %c0_5 = arith.constant 0 : index
    %c0_6 = arith.constant 0 : index
    %6 = vector.load %arg6[%c0_5, %c0_6] : memref<128x8xf32, #tpu.memory_space<vmem>>, vector<128x1xf32>
    tpu.vector_store %arg6[%c0_5, %c0_6], %5 {strides = array<i32>} : memref<128x8xf32, #tpu.memory_space<vmem>>, vector<128x1xf32>,
    %c1 = arith.constant 1 : index
    %c0_7 = arith.constant 0 : index
    %c0_8 = arith.constant 0 : index
    %7 = vector.load %arg2[%c1, %c0_7, %c0_8] : memref<8x16x256xf32, #tpu.memory_space<vmem>>, vector<1x16x256xf32>
    %8 = vector.shape_cast %7 : vector<1x16x256xf32> to vector<16x256xf32>
    %cst_9 = arith.constant dense<0.000000e+00> : vector<128x256xf32>
    %9 = tpu.matmul %0, %8, %cst_9 {dimension_numbers = #tpu.dot_dimension_numbers<[1], [0], [0], [1], [0, 0, 1, 1], [], []>} : vector<128x16xf32>, vector<16x256xf32>, vector<128x256xf32> -> vector<128x256xf32>
    %cst_10 = arith.constant dense<0xFF800000> : vector<128xf32>
    %10 = vector.multi_reduction <maximumf>, %9, %cst_10 [1] : vector<128x256xf32> to vector<128xf32>
    %11 = vector.shape_cast %10 : vector<128xf32> to vector<128x1xf32>
    %c0_11 = arith.constant 0 : index
    %c1_12 = arith.constant 1 : index
    %12 = vector.load %arg6[%c0_11, %c1_12] : memref<128x8xf32, #tpu.memory_space<vmem>>, vector<128x1xf32>
    tpu.vector_store %arg6[%c0_11, %c1_12], %11 {strides = array<i32>} : memref<128x8xf32, #tpu.memory_space<vmem>>, vector<128x1xf32>,
    %c2 = arith.constant 2 : index
    %c0_13 = arith.constant 0 : index
    %c0_14 = arith.constant 0 : index
    %13 = vector.load %arg2[%c2, %c0_13, %c0_14] : memref<8x16x256xf32, #tpu.memory_space<vmem>>, vector<1x16x256xf32>
    %14 = vector.shape_cast %13 : vector<1x16x256xf32> to vector<16x256xf32>
    %cst_15 = arith.constant dense<0.000000e+00> : vector<128x256xf32>
    %15 = tpu.matmul %0, %14, %cst_15 {dimension_numbers = #tpu.dot_dimension_numbers<[1], [0], [0], [1], [0, 0, 1, 1], [], []>} : vector<128x16xf32>, vector<16x256xf32>, vector<128x256xf32> -> vector<128x256xf32>
    %cst_16 = arith.constant dense<0xFF800000> : vector<128xf32>
    %16 = vector.multi_reduction <maximumf>, %15, %cst_16 [1] : vector<128x256xf32> to vector<128xf32>
    %17 = vector.shape_cast %16 : vector<128xf32> to vector<128x1xf32>
    %c0_17 = arith.constant 0 : index
    %c2_18 = arith.constant 2 : index
    %18 = vector.load %arg6[%c0_17, %c2_18] : memref<128x8xf32, #tpu.memory_space<vmem>>, vector<128x1xf32>
    tpu.vector_store %arg6[%c0_17, %c2_18], %17 {strides = array<i32>} : memref<128x8xf32, #tpu.memory_space<vmem>>, vector<128x1xf32>,
    %c3 = arith.constant 3 : index
    %c0_19 = arith.constant 0 : index
    %c0_20 = arith.constant 0 : index
    %19 = vector.load %arg2[%c3, %c0_19, %c0_20] : memref<8x16x256xf32, #tpu.memory_space<vmem>>, vector<1x16x256xf32>
    %20 = vector.shape_cast %19 : vector<1x16x256xf32> to vector<16x256xf32>
    %cst_21 = arith.constant dense<0.000000e+00> : vector<128x256xf32>
    %21 = tpu.matmul %0, %20, %cst_21 {dimension_numbers = #tpu.dot_dimension_numbers<[1], [0], [0], [1], [0, 0, 1, 1], [], []>} : vector<128x16xf32>, vector<16x256xf32>, vector<128x256xf32> -> vector<128x256xf32>
    %cst_22 = arith.constant dense<0xFF800000> : vector<128xf32>
    %22 = vector.multi_reduction <maximumf>, %21, %cst_22 [1] : vector<128x256xf32> to vector<128xf32>
    %23 = vector.shape_cast %22 : vector<128xf32> to vector<128x1xf32>
    %c0_23 = arith.constant 0 : index
    %c3_24 = arith.constant 3 : index
    %24 = vector.load %arg6[%c0_23, %c3_24] : memref<128x8xf32, #tpu.memory_space<vmem>>, vector<128x1xf32>
    tpu.vector_store %arg6[%c0_23, %c3_24], %23 {strides = array<i32>} : memref<128x8xf32, #tpu.memory_space<vmem>>, vector<128x1xf32>,
    %c4 = arith.constant 4 : index
    %c0_25 = arith.constant 0 : index
    %c0_26 = arith.constant 0 : index
    %25 = vector.load %arg2[%c4, %c0_25, %c0_26] : memref<8x16x256xf32, #tpu.memory_space<vmem>>, vector<1x16x256xf32>
    %26 = vector.shape_cast %25 : vector<1x16x256xf32> to vector<16x256xf32>
    %cst_27 = arith.constant dense<0.000000e+00> : vector<128x256xf32>
    %27 = tpu.matmul %0, %26, %cst_27 {dimension_numbers = #tpu.dot_dimension_numbers<[1], [0], [0], [1], [0, 0, 1, 1], [], []>} : vector<128x16xf32>, vector<16x256xf32>, vector<128x256xf32> -> vector<128x256xf32>
    %cst_28 = arith.constant dense<0xFF800000> : vector<128xf32>
    %28 = vector.multi_reduction <maximumf>, %27, %cst_28 [1] : vector<128x256xf32> to vector<128xf32>
    %29 = vector.shape_cast %28 : vector<128xf32> to vector<128x1xf32>
    %c0_29 = arith.constant 0 : index
    %c4_30 = arith.constant 4 : index
    %30 = vector.load %arg6[%c0_29, %c4_30] : memref<128x8xf32, #tpu.memory_space<vmem>>, vector<128x1xf32>
    tpu.vector_store %arg6[%c0_29, %c4_30], %29 {strides = array<i32>} : memref<128x8xf32, #tpu.memory_space<vmem>>, vector<128x1xf32>,
    %c5 = arith.constant 5 : index
    %c0_31 = arith.constant 0 : index
    %c0_32 = arith.constant 0 : index
    %31 = vector.load %arg2[%c5, %c0_31, %c0_32] : memref<8x16x256xf32, #tpu.memory_space<vmem>>, vector<1x16x256xf32>
    %32 = vector.shape_cast %31 : vector<1x16x256xf32> to vector<16x256xf32>
    %cst_33 = arith.constant dense<0.000000e+00> : vector<128x256xf32>
    %33 = tpu.matmul %0, %32, %cst_33 {dimension_numbers = #tpu.dot_dimension_numbers<[1], [0], [0], [1], [0, 0, 1, 1], [], []>} : vector<128x16xf32>, vector<16x256xf32>, vector<128x256xf32> -> vector<128x256xf32>
    %cst_34 = arith.constant dense<0xFF800000> : vector<128xf32>
    %34 = vector.multi_reduction <maximumf>, %33, %cst_34 [1] : vector<128x256xf32> to vector<128xf32>
    %35 = vector.shape_cast %34 : vector<128xf32> to vector<128x1xf32>
    %c0_35 = arith.constant 0 : index
    %c5_36 = arith.constant 5 : index
    %36 = vector.load %arg6[%c0_35, %c5_36] : memref<128x8xf32, #tpu.memory_space<vmem>>, vector<128x1xf32>
    tpu.vector_store %arg6[%c0_35, %c5_36], %35 {strides = array<i32>} : memref<128x8xf32, #tpu.memory_space<vmem>>, vector<128x1xf32>,
    %c6 = arith.constant 6 : index
    %c0_37 = arith.constant 0 : index
    %c0_38 = arith.constant 0 : index
    %37 = vector.load %arg2[%c6, %c0_37, %c0_38] : memref<8x16x256xf32, #tpu.memory_space<vmem>>, vector<1x16x256xf32>
    %38 = vector.shape_cast %37 : vector<1x16x256xf32> to vector<16x256xf32>
    %cst_39 = arith.constant dense<0.000000e+00> : vector<128x256xf32>
    %39 = tpu.matmul %0, %38, %cst_39 {dimension_numbers = #tpu.dot_dimension_numbers<[1], [0], [0], [1], [0, 0, 1, 1], [], []>} : vector<128x16xf32>, vector<16x256xf32>, vector<128x256xf32> -> vector<128x256xf32>
    %cst_40 = arith.constant dense<0xFF800000> : vector<128xf32>
    %40 = vector.multi_reduction <maximumf>, %39, %cst_40 [1] : vector<128x256xf32> to vector<128xf32>
    %41 = vector.shape_cast %40 : vector<128xf32> to vector<128x1xf32>
    %c0_41 = arith.constant 0 : index
    %c6_42 = arith.constant 6 : index
    %42 = vector.load %arg6[%c0_41, %c6_42] : memref<128x8xf32, #tpu.memory_space<vmem>>, vector<128x1xf32>
    tpu.vector_store %arg6[%c0_41, %c6_42], %41 {strides = array<i32>} : memref<128x8xf32, #tpu.memory_space<vmem>>, vector<128x1xf32>,
    %c7 = arith.constant 7 : index
    %c0_43 = arith.constant 0 : index
    %c0_44 = arith.constant 0 : index
    %43 = vector.load %arg2[%c7, %c0_43, %c0_44] : memref<8x16x256xf32, #tpu.memory_space<vmem>>, vector<1x16x256xf32>
    %44 = vector.shape_cast %43 : vector<1x16x256xf32> to vector<16x256xf32>
    %cst_45 = arith.constant dense<0.000000e+00> : vector<128x256xf32>
    %45 = tpu.matmul %0, %44, %cst_45 {dimension_numbers = #tpu.dot_dimension_numbers<[1], [0], [0], [1], [0, 0, 1, 1], [], []>} : vector<128x16xf32>, vector<16x256xf32>, vector<128x256xf32> -> vector<128x256xf32>
    %cst_46 = arith.constant dense<0xFF800000> : vector<128xf32>
    %46 = vector.multi_reduction <maximumf>, %45, %cst_46 [1] : vector<128x256xf32> to vector<128xf32>
    %47 = vector.shape_cast %46 : vector<128xf32> to vector<128x1xf32>
    %c0_47 = arith.constant 0 : index
    %c7_48 = arith.constant 7 : index
    %48 = vector.load %arg6[%c0_47, %c7_48] : memref<128x8xf32, #tpu.memory_space<vmem>>, vector<128x1xf32>
    tpu.vector_store %arg6[%c0_47, %c7_48], %47 {strides = array<i32>} : memref<128x8xf32, #tpu.memory_space<vmem>>, vector<128x1xf32>,
    %c0_49 = arith.constant 0 : index
    %c0_50 = arith.constant 0 : index
    %49 = vector.load %arg6[%c0_49, %c0_50] : memref<128x8xf32, #tpu.memory_space<vmem>>, vector<128x8xf32>
    %50 = tpu.transpose %49, [1, 0] : vector<128x8xf32> -> vector<8x128xf32>
    %c0_51 = arith.constant 0 : index
    %c0_52 = arith.constant 0 : index
    %51 = vector.load %arg4[%c0_51, %c0_52] : memref<1x128xf32, #tpu.memory_space<vmem>>, vector<1x128xf32>
    %52 = vector.broadcast %51 : vector<1x128xf32> to vector<8x128xf32>
    %53 = arith.addf %50, %52 : vector<8x128xf32>
    %cst_53 = arith.constant 0.000000e+00 : f32
    %54 = vector.broadcast %cst_53 : f32 to vector<8x128xf32>
    %55 = arith.maximumf %53, %54 : vector<8x128xf32>
    %c0_54 = arith.constant 0 : index
    %c0_55 = arith.constant 0 : index
    %56 = vector.load %arg5[%c0_54, %c0_55] : memref<8x128xf32, #tpu.memory_space<vmem>>, vector<8x128xf32>
    tpu.vector_store %arg5[%c0_54, %c0_55], %55 {strides = array<i32>} : memref<8x128xf32, #tpu.memory_space<vmem>>, vector<8x128xf32>,
    return
  }
  func.func @transform_0(%arg0: i32, %arg1: i32) -> (i32, i32, i32) {
    %c0_i32 = arith.constant 0 : i32
    %c0_i32_0 = arith.constant 0 : i32
    %c0_i32_1 = arith.constant 0 : i32
    return %arg1, %c0_i32, %c0_i32_0 : i32, i32, i32
  }
  func.func @transform_1(%arg0: i32, %arg1: i32) -> (i32, i32) {
    %c0_i32 = arith.constant 0 : i32
    %c0_i32_0 = arith.constant 0 : i32
    return %arg0, %c0_i32 : i32, i32
  }
  func.func @transform_2(%arg0: i32, %arg1: i32) -> (i32, i32) {
    %c0_i32 = arith.constant 0 : i32
    %c0_i32_0 = arith.constant 0 : i32
    return %c0_i32, %arg0 : i32, i32
  }
  func.func @transform_3(%arg0: i32, %arg1: i32) -> (i32, i32) {
    %c0_i32 = arith.constant 0 : i32
    return %arg1, %arg0 : i32, i32
  }
}

</mosaic_0001>

<bundles_post_ra>
// kernel: tpu_custom_call.1
= control target key start
LH: loop header
LB: loop body
LE: loop exit
PB: predicated region body
PF: predicated region fallthrough
CT: control target
= control target key end

     0   :  { %8 = vsyncpa [#allocation4], 0  ;;  %s3470_s0 = inlined_call_operand.hbm [shape: f32[16,16,256], index: 0, kind: input, shape index: {}]   ;;  %s3471_s1 = inlined_call_operand.vmem [shape: f32[128,16], index: 1, kind: input, shape index: {}]   ;;  %s3472_s2 = inlined_call_operand.vmem [shape: f32[1,128], index: 2, kind: input, shape index: {}]   ;;  %s3473_s3 = inlined_call_operand.hbm [shape: f32[16,128], index: 3, kind: output, shape index: {}]  }
   0x1   :  { %10 = vsyncpa [#allocation4 + $0x1], 0 }
   0x2   :  { %11 = vsyncpa [#allocation5], 0 }
   0x3   :  { %13 = vsyncpa [#allocation5 + $0x1], 0  ;;  %s2708_s12 = smov 0   ;;  %s2710_s13 = smov 0  }
   0x4   :  { %s2712_s14 = smov 0   ;;  %s2714_s15 = smov 0  }
   0x5   :  { %s2716_s16 = smov 0   ;;  %s2718_s17 = smov 0  }
   0x6 LB: > { %s2332_s18 = sadd.s32 4294967295, %s2681_s17   ;;  %s2333_s19 = sadd.s32 4294967294, %s2681_s17   ;;  %s2681_s17 = sphi %s2718_s17, %s19_s17   ;;  %s2677_s16 = sphi %s2716_s16, %s3484_s16   ;;  %s2673_s15 = sphi %s2714_s15, %s3483_s15   ;;  %s2669_s14 = sphi %s2712_s14, %s3482_s14   ;;  %s2665_s13 = sphi %s2710_s13, %s3481_s13   ;;  %s2661_s12 = sphi %s2708_s12, %s3480_s12  }
   0x7   : > { %s28_s20 = sadd.s32 1, %s2677_s16  ;;  %s38_s21 = sadd.s32 1, %s2669_s14 }
   0x8   : > { %p29_p0 = scmp.ge.s32.totalorder %s28_s20, 2  ;;  %p45_p1 = scmp.ne.s32.totalorder %s2669_s14, %s2665_s13 }
   0x9   : > { %p46_p2 = scmp.eq.s32.totalorder %s2681_s17, 0  ;;  %p51_p3 = scmp.ne.s32.totalorder %s2665_s13, %s2661_s12 }
   0xa   : > { %s3486_s20 = smov (%p29_p0, %s28_s20), 0  ;;  %p52_p5 = scmp.eq.s32.totalorder %s2332_s18, 0 }
   0xb   : > { %p2749_p4 = por %p46_p2, %p45_p1  ;;  %s35_s23 = ssub.s32 %s2677_s16, %s3486_s20 }
   0xc   : > { %p129_p6 = scmp.eq.s32.totalorder %s2332_s18, 1  ;;  %p36_p7 = scmp.eq.s32.totalorder %s35_s23, 0 }
   0xd   : > { %p2755_p8 = por %p52_p5, %p51_p3  ;;  %p135_p10 = scmp.eq.s32.totalorder %s2333_s19, 1 }
   0xe   : > { %p2759_p9 = por %p129_p6, %p45_p1  ;;  %p2520_p13 = scmp.lt.s32.totalorder %s2681_s17, 2 }
   0xf   : > { %s2764_s26 = scalar_select %p36_p7, %s2669_s14, %s38_s21  }
  0x10   : > { %p2766_p11 = por %p135_p10, %p51_p3  ;;  %s170_s28 = sand.u32 1, %s2669_s14  }
  0x11   : > { %s2338_s29 = sshll.u32 %s170_s28, 8  ;;  %s2507_s30 = sshll.u32 %s2677_s16, 12 }
  0x12   : > { %s181_s6 = scalar_lea.hbm %s3470_s0, %s2507_s30  ;;  %s174_s7 = scalar_lea.vmem [#allocation3], %s2338_s29 }
  0x13   : > { %s182_s8 = sshll.u32 %s174_s7, 4  ;;  %p2779_p0 = pnand %p2520_p13, %p2749_p4  ;;  %s183_s8 = int_to_ptr.vmem [resolvable:$true] %s182_s8 }
  0x14   : > { %p2342_p1 = scmp.ge.s32.totalorder %s2681_s17, 1  ;;  %s171_s10 = scalar_lea.sflag [#allocation4], %s170_s28 }
  0x15   : > { %p2575_p2 = pneg %p2779_p0  ;;  %s2586_s11 = scalar_lea.vmem %s183_s8, 4096 }
  0x16   : > { %p2587_p3 = scmp.ne.s32.totalorder %s183_s8, %s2586_s11  ;;  %s2683_s18 = smov [#allocation3]  }
  0x17   : > { %s2591_s19 = sshll.u32 %s2683_s18, 4  ;;  %s2592_s19 = int_to_ptr.vmem [resolvable:$false] %s2591_s19 }
  0x18   : > { %p2589_p5 = pnand %p2587_p3, %p2575_p2  ;;  %s2593_s21 = scalar_lea.vmem %s2592_s19, 8192 }
  0x19   : > { %p2594_p7 = scmp.lt.s32.totalorder %s183_s8, %s2592_s19  ;;  %p2595_p10 = scmp.lt.s32.totalorder %s2593_s21, %s2586_s11 }
  0x1a   : > { %p2590_p6 = pneg %p2589_p5 }
  0x1b   : > { %p2596_p12 = por %p2595_p10, %p2594_p7 }
  0x1d   : > { %p2597_p4 = pnand %p2596_p12, %p2590_p6 }
  0x1f   : > { %2600 = shalt.err (!%p2597_p4)
}
  0x20   : > { %s2684_s22 = smov 256   ;;  %s2685_s23 = smov 16  }
  0x21   : > { %2515 = dma.hbm_to_vmem [thread:$0]  (!%p2779_p0), %s181_s6, 4096, %s183_s8, %s171_s10, %s2684_s22, %s2684_s22, %s2685_s23  }
  0x22   : > { %p190_p13 = scmp.lt.s32.totalorder %s2681_s17, 3 }
  0x24   : > { %p191_p2 = pnand %p2342_p1, %p190_p13 }
  0x25   : > { %s2792_s28 = sand.u32 (!%p191_p2), 1, %s2665_s13  }
  0x26   : > { %194 = sbr.rel (%p191_p2) target bundleno = 733 (0x2dd), region = 32  ;;  %s2343_s29 = sshll.u32 (!%p191_p2), %s2792_s28, 8 }
  0x27   : > { %s197_s30 = scalar_lea.sflag (!%p191_p2), [#allocation4], %s2792_s28  ;;  %s2796_s4 = scalar_lea.vmem (!%p191_p2), [#allocation3], %s2343_s29 }
  0x2b   : > { %2652 = dma.done.wait (%p2755_p8), %s197_s30, 4096  }
  0x2c   : > { %2654 = vsyncadd (%p2755_p8), %s197_s30, 4294963200  ;;  %v2686_v0 = vmov 0.0   ;;  %v260_v1 = vld [vmem:[%s2796_s4 + $0x18] sm:$0xff]  ;;  %v259_v3 = vld [vmem:[%s2796_s4 + $0x10] sm:$0xff]  ;;  %vm261_vm0 = vcmask 130048   ;;  %vm519_vm1 = vcmask 7168  }
  0x2d   : > { %374 = vmatprep.mubr.f32.mxu0 %v2686_v0  ;;  %605 = vmatprep.mubr.f32.mxu1 %v2686_v0  ;;  %v2364_v2 = vld [vmem:[%s2796_s4 + $0x38] sm:$0xff]  ;;  %v2363_v4 = vld [vmem:[%s2796_s4 + $0x30] sm:$0xff]  ;;  %v258_v5 = vld [vmem:[%s2796_s4 + $0x8] sm:$0xff]  ;;  %vm750_vm2 = vcmask 15368   ;;  %vm981_vm3 = vcmask 23568   ;;  %vm1212_vm4 = vcmask 31768  }
  0x2e   : > { %338 = vmatprep.subr.mxu0 %v260_v1  ;;  %569 = vmatprep.subr.mxu1 %v2364_v2  ;;  %v2362_v6 = vld [vmem:[%s2796_s4 + $0x28] sm:$0xff]  ;;  %v257_v7 = vld [vmem:[%s2796_s4] sm:$0xff]  ;;  %v2384_v10 = vld [vmem:[%s2796_s4 + $0x58] sm:$0xff]  ;;  %vm1443_vm5 = vcmask 39968   ;;  %vm1674_vm6 = vcmask 48168   ;;  %vm1905_vm7 = vcmask 56368  }
  0x2f   : > { %339 = vmatpush1.msra.mxu0 %v259_v3  ;;  %570 = vmatpush1.msra.mxu1 %v2363_v4  ;;  %v2361_v8 = vld [vmem:[%s2796_s4 + $0x20] sm:$0xff]  ;;  %v2404_v11 = vld [vmem:[%s2796_s4 + $0x78] sm:$0xff]  ;;  %v2383_v12 = vld [vmem:[%s2796_s4 + $0x50] sm:$0xff]  ;;  %vm2136_vm8 = vcmask 64568   ;;  %s2503_s8 = sshll.u32 %s2673_s15, 7  ;;  %s2212_s21 = scalar_lea.sflag [#allocation5], %s2792_s28 }
  0x30   : > { %v2815_v9 = vld [vmem:[%s3471_s1] sm:$0xff]  ;;  %340 = vmatprep.subr.mxu0 %v258_v5  ;;  %571 = vmatprep.subr.mxu1 %v2362_v6  ;;  %v2403_v13 = vld [vmem:[%s2796_s4 + $0x70] sm:$0xff]  ;;  %v2828_v14 = vld [vmem:[%s3471_s1 + $0x8] sm:$0xff]  ;;  %s2224_s19 = scalar_lea.hbm %s3473_s3, %s2503_s8  ;;  %s2687_s23 = smov [#allocation6]  }
  0x31   : > { %341 = vmatpush1.msra.mxu0 %v257_v7  ;;  %572 = vmatpush1.msra.mxu1 %v2361_v8  ;;  %v2382_v15 = vld [vmem:[%s2796_s4 + $0x48] sm:$0xff]  ;;  %v2381_v17 = vld [vmem:[%s2796_s4 + $0x40] sm:$0xff]  ;;  %v2845_v19 = vld [vmem:[%s3471_s1 + $0x10] sm:$0xff]  ;;  %s2605_s29 = sshll.u32 %s2687_s23, 4  ;;  %s2606_s29 = int_to_ptr.vmem [resolvable:$false] %s2605_s29 }
  0x32   : > { %2345 = vmatmul.mubr.msk.f32.vlgmr.msra.gmra.mxu0 %vm261_vm0, %v2815_v9  ;;  %2365 = vmatmul.mubr.msk.f32.vlgmr.msra.gmra.mxu1 %vm261_vm0, %v2815_v9  ;;  %v2402_v16 = vld [vmem:[%s2796_s4 + $0x68] sm:$0xff]  ;;  %v2401_v18 = vld [vmem:[%s2796_s4 + $0x60] sm:$0xff]  ;;  %v2424_v20 = vld [vmem:[%s2796_s4 + $0x98] sm:$0xff]  ;;  %s2607_s15 = scalar_lea.vmem %s2606_s29, 256 }
  0x33   : > { %800 = vmatprep.subr.mxu0 %v2384_v10  ;;  %1031 = vmatprep.subr.mxu1 %v2404_v11  ;;  %v2444_v21 = vld [vmem:[%s2796_s4 + $0xb8] sm:$0xff]  ;;  %v2869_v23 = vld [vmem:[%s3471_s1 + $0x20] sm:$0xff]  ;;  %v2880_v24 = vld [vmem:[%s3471_s1 + $0x28] sm:$0xff] }
  0x34   : > { %801 = vmatpush1.msra.mxu0 %v2383_v12  ;;  %1032 = vmatpush1.msra.mxu1 %v2403_v13  ;;  %v2858_v22 = vld [vmem:[%s3471_s1 + $0x18] sm:$0xff]  ;;  %v2891_v25 = vld [vmem:[%s3471_s1 + $0x30] sm:$0xff]  ;;  %v2913_v27 = vld [vmem:[%s3471_s1 + $0x40] sm:$0xff] }
  0x35   : > { %380 = vmatprep.mubr.f32.mxu0 %v2686_v0  ;;  %611 = vmatprep.mubr.f32.mxu1 %v2686_v0  ;;  %v2902_v26 = vld [vmem:[%s3471_s1 + $0x38] sm:$0xff]  ;;  %v2924_v28 = vld [vmem:[%s3471_s1 + $0x48] sm:$0xff]  ;;  %v2935_v29 = vld [vmem:[%s3471_s1 + $0x50] sm:$0xff] }
  0x36   : > { %2346 = vmatmul.mubr.msk.f32.gmra.mxu0 %vm261_vm0, %v2828_v14  ;;  %2366 = vmatmul.mubr.msk.f32.gmra.mxu1 %vm261_vm0, %v2828_v14  ;;  %v2946_v30 = vld [vmem:[%s3471_s1 + $0x58] sm:$0xff]  ;;  %v2957_v31 = vld [vmem:[%s3471_s1 + $0x60] sm:$0xff]  ;;  %v2968_v32 = vld [vmem:[%s3471_s1 + $0x68] sm:$0xff] }
  0x37   : > { %386 = vmatprep.mubr.f32.mxu0 %v2686_v0  ;;  %617 = vmatprep.mubr.f32.mxu1 %v2686_v0  ;;  %v2979_v33 = vld [vmem:[%s3471_s1 + $0x70] sm:$0xff]  ;;  %v2990_v34 = vld [vmem:[%s3471_s1 + $0x78] sm:$0xff]  ;;  %v2422_v37 = vld [vmem:[%s2796_s4 + $0x88] sm:$0xff] }
  0x38   : > { %802 = vmatprep.subr.mxu0 %v2382_v15  ;;  %1033 = vmatprep.subr.mxu1 %v2402_v16  ;;  %v2423_v35 = vld [vmem:[%s2796_s4 + $0x90] sm:$0xff]  ;;  %v2442_v38 = vld [vmem:[%s2796_s4 + $0xa8] sm:$0xff]  ;;  %v2421_v39 = vld [vmem:[%s2796_s4 + $0x80] sm:$0xff] }
  0x39   : > { %803 = vmatpush1.msra.mxu0 %v2381_v17  ;;  %1034 = vmatpush1.msra.mxu1 %v2401_v18  ;;  %v2443_v36 = vld [vmem:[%s2796_s4 + $0xb0] sm:$0xff]  ;;  %v2441_v40 = vld [vmem:[%s2796_s4 + $0xa0] sm:$0xff]  ;;  %v2464_v41 = vld [vmem:[%s2796_s4 + $0xd8] sm:$0xff] }
  0x3a   : > { %2347 = vmatmul.mubr.msk.f32.gmra.mxu0 %vm261_vm0, %v2845_v19  ;;  %2367 = vmatmul.mubr.msk.f32.gmra.mxu1 %vm261_vm0, %v2845_v19  ;;  %v2484_v42 = vld [vmem:[%s2796_s4 + $0xf8] sm:$0xff]  ;;  %v2463_v43 = vld [vmem:[%s2796_s4 + $0xd0] sm:$0xff]  ;;  %v2462_v45 = vld [vmem:[%s2796_s4 + $0xc8] sm:$0xff] }
  0x3b   : > { %392 = vmatprep.mubr.f32.mxu0 %v2686_v0  ;;  %623 = vmatprep.mubr.f32.mxu1 %v2686_v0  ;;  %v2483_v44 = vld [vmem:[%s2796_s4 + $0xf0] sm:$0xff]  ;;  %v2482_v46 = vld [vmem:[%s2796_s4 + $0xe8] sm:$0xff]  ;;  %v2461_v47 = vld [vmem:[%s2796_s4 + $0xc0] sm:$0xff] }
  0x3c   : > { %1262 = vmatprep.subr.mxu0 %v2424_v20  ;;  %1493 = vmatprep.subr.mxu1 %v2444_v21  ;;  %v2481_v48 = vld [vmem:[%s2796_s4 + $0xe0] sm:$0xff]  ;;  %s2344_s4 = sshll.u32 %s2792_s28, 3 }
  0x3d   : > { %s230_s9 = scalar_lea.vmem [#allocation6], %s2344_s4 }
  0x3e   : > { %2348 = vmatmul.mubr.msk.f32.gmra.mxu0 %vm261_vm0, %v2858_v22  ;;  %2368 = vmatmul.mubr.msk.f32.gmra.mxu1 %vm261_vm0, %v2858_v22  ;;  %s2226_s10 = sshll.u32 %s230_s9, 4  ;;  %s2227_s10 = int_to_ptr.vmem [resolvable:$true] %s2226_s10 }
  0x3f   : > { %398 = vmatprep.mubr.f32.mxu0 %v2686_v0  ;;  %629 = vmatprep.mubr.f32.mxu1 %v2686_v0  ;;  %s2601_s22 = scalar_lea.vmem %s2227_s10, 128  ;;  %p2608_p1 = scmp.lt.s32.totalorder %s2227_s10, %s2606_s29 }
  0x40   : > { %p2602_p8 = scmp.ne.s32.totalorder %s2227_s10, %s2601_s22  ;;  %p2609_p3 = scmp.lt.s32.totalorder %s2607_s15, %s2601_s22 }
  0x42   : > { %2349 = vmatmul.mubr.msk.f32.gmra.mxu0 %vm261_vm0, %v2869_v23  ;;  %2369 = vmatmul.mubr.msk.f32.gmra.mxu1 %vm261_vm0, %v2869_v23  ;;  %p2603_p12 = pnand %p2602_p8, %p2759_p9  ;;  %p2610_p5 = por %p2609_p3, %p2608_p1 }
  0x43   : > { %404 = vmatprep.mubr.f32.mxu0 %v2686_v0  ;;  %635 = vmatprep.mubr.f32.mxu1 %v2686_v0 }
  0x44   : > { %p2604_p0 = pneg %p2603_p12 }
  0x46   : > { %2350 = vmatmul.mubr.msk.f32.gmra.mxu0 %vm261_vm0, %v2880_v24  ;;  %2370 = vmatmul.mubr.msk.f32.gmra.mxu1 %vm261_vm0, %v2880_v24  ;;  %p2611_p6 = pnand %p2610_p5, %p2604_p0 }
  0x47   : > { %410 = vmatprep.mubr.f32.mxu0 %v2686_v0  ;;  %641 = vmatprep.mubr.f32.mxu1 %v2686_v0 }
  0x4a   : > { %2351 = vmatmul.mubr.msk.f32.gmra.mxu0 %vm261_vm0, %v2891_v25  ;;  %2371 = vmatmul.mubr.msk.f32.gmra.mxu1 %vm261_vm0, %v2891_v25 }
  0x4b   : > { %416 = vmatprep.mubr.f32.mxu0 %v2686_v0  ;;  %647 = vmatprep.mubr.f32.mxu1 %v2686_v0 }
  0x4e   : > { %2352 = vmatmul.mubr.msk.f32.gmra.mxu0 %vm261_vm0, %v2902_v26  ;;  %2372 = vmatmul.mubr.msk.f32.gmra.mxu1 %vm261_vm0, %v2902_v26 }
  0x4f   : > { %422 = vmatprep.mubr.f32.mxu0 %v2686_v0  ;;  %653 = vmatprep.mubr.f32.mxu1 %v2686_v0 }
  0x52   : > { %2353 = vmatmul.mubr.msk.f32.gmra.mxu0 %vm261_vm0, %v2913_v27  ;;  %2373 = vmatmul.mubr.msk.f32.gmra.mxu1 %vm261_vm0, %v2913_v27 }
  0x53   : > { %428 = vmatprep.mubr.f32.mxu0 %v2686_v0  ;;  %659 = vmatprep.mubr.f32.mxu1 %v2686_v0 }
  0x56   : > { %2354 = vmatmul.mubr.msk.f32.gmra.mxu0 %vm261_vm0, %v2924_v28  ;;  %2374 = vmatmul.mubr.msk.f32.gmra.mxu1 %vm261_vm0, %v2924_v28 }
  0x57   : > { %434 = vmatprep.mubr.f32.mxu0 %v2686_v0  ;;  %665 = vmatprep.mubr.f32.mxu1 %v2686_v0 }
  0x5a   : > { %2355 = vmatmul.mubr.msk.f32.gmra.mxu0 %vm261_vm0, %v2935_v29  ;;  %2375 = vmatmul.mubr.msk.f32.gmra.mxu1 %vm261_vm0, %v2935_v29 }
  0x5b   : > { %440 = vmatprep.mubr.f32.mxu0 %v2686_v0  ;;  %671 = vmatprep.mubr.f32.mxu1 %v2686_v0 }
  0x5e   : > { %2356 = vmatmul.mubr.msk.f32.gmra.mxu0 %vm261_vm0, %v2946_v30  ;;  %2376 = vmatmul.mubr.msk.f32.gmra.mxu1 %vm261_vm0, %v2946_v30 }
  0x5f   : > { %446 = vmatprep.mubr.f32.mxu0 %v2686_v0  ;;  %677 = vmatprep.mubr.f32.mxu1 %v2686_v0 }
  0x62   : > { %2357 = vmatmul.mubr.msk.f32.gmra.mxu0 %vm261_vm0, %v2957_v31  ;;  %2377 = vmatmul.mubr.msk.f32.gmra.mxu1 %vm261_vm0, %v2957_v31 }
  0x63   : > { %452 = vmatprep.mubr.f32.mxu0 %v2686_v0  ;;  %683 = vmatprep.mubr.f32.mxu1 %v2686_v0 }
  0x66   : > { %2358 = vmatmul.mubr.msk.f32.gmra.mxu0 %vm261_vm0, %v2968_v32  ;;  %2378 = vmatmul.mubr.msk.f32.gmra.mxu1 %vm261_vm0, %v2968_v32 }
  0x67   : > { %458 = vmatprep.mubr.f32.mxu0 %v2686_v0  ;;  %689 = vmatprep.mubr.f32.mxu1 %v2686_v0 }
  0x6a   : > { %2359 = vmatmul.mubr.msk.f32.gmra.mxu0 %vm261_vm0, %v2979_v33  ;;  %2379 = vmatmul.mubr.msk.f32.gmra.mxu1 %vm261_vm0, %v2979_v33 }
  0x6b   : > { %464 = vmatprep.mubr.f32.mxu0 %v2686_v0  ;;  %695 = vmatprep.mubr.f32.mxu1 %v2686_v0 }
  0x6e   : > { %2360 = vmatmul.mubr.msk.f32.gmra.mxu0 %vm261_vm0, %v2990_v34  ;;  %2380 = vmatmul.mubr.msk.f32.gmra.mxu1 %vm261_vm0, %v2990_v34 }
  0x6f   : > { %836 = vmatprep.mubr.f32.mxu0 %v2686_v0  ;;  %1067 = vmatprep.mubr.f32.mxu1 %v2686_v0 }
  0x72   : > { %2385 = vmatmul.mubr.msk.f32.vlgmr.msra.gmra.mxu0 %vm261_vm0, %v2815_v9  ;;  %2405 = vmatmul.mubr.msk.f32.vlgmr.msra.gmra.mxu1 %vm261_vm0, %v2815_v9 }
  0x73   : > { %1263 = vmatpush1.msra.mxu0 %v2423_v35  ;;  %1494 = vmatpush1.msra.mxu1 %v2443_v36 }
  0x74   : > { %842 = vmatprep.mubr.f32.mxu0 %v2686_v0  ;;  %1073 = vmatprep.mubr.f32.mxu1 %v2686_v0 }
  0x75   : > { %1264 = vmatprep.subr.mxu0 %v2422_v37  ;;  %1495 = vmatprep.subr.mxu1 %v2442_v38 }
  0x76   : > { %2386 = vmatmul.mubr.msk.f32.gmra.mxu0 %vm261_vm0, %v2828_v14  ;;  %2406 = vmatmul.mubr.msk.f32.gmra.mxu1 %vm261_vm0, %v2828_v14 }
  0x77   : > { %848 = vmatprep.mubr.f32.mxu0 %v2686_v0  ;;  %1079 = vmatprep.mubr.f32.mxu1 %v2686_v0 }
  0x78   : > { %1265 = vmatpush1.msra.mxu0 %v2421_v39  ;;  %1496 = vmatpush1.msra.mxu1 %v2441_v40 }
  0x79   : > { %1724 = vmatprep.subr.mxu0 %v2464_v41  ;;  %1955 = vmatprep.subr.mxu1 %v2484_v42 }
  0x7a   : > { %2387 = vmatmul.mubr.msk.f32.gmra.mxu0 %vm261_vm0, %v2845_v19  ;;  %2407 = vmatmul.mubr.msk.f32.gmra.mxu1 %vm261_vm0, %v2845_v19 }
  0x7b   : > { %854 = vmatprep.mubr.f32.mxu0 %v2686_v0  ;;  %1085 = vmatprep.mubr.f32.mxu1 %v2686_v0 }
  0x7e   : > { %2388 = vmatmul.mubr.msk.f32.gmra.mxu0 %vm261_vm0, %v2858_v22  ;;  %2408 = vmatmul.mubr.msk.f32.gmra.mxu1 %vm261_vm0, %v2858_v22 }
  0x7f   : > { %860 = vmatprep.mubr.f32.mxu0 %v2686_v0  ;;  %1091 = vmatprep.mubr.f32.mxu1 %v2686_v0 }
  0x82   : > { %2389 = vmatmul.mubr.msk.f32.gmra.mxu0 %vm261_vm0, %v2869_v23  ;;  %2409 = vmatmul.mubr.msk.f32.gmra.mxu1 %vm261_vm0, %v2869_v23 }
  0x83   : > { %866 = vmatprep.mubr.f32.mxu0 %v2686_v0  ;;  %1097 = vmatprep.mubr.f32.mxu1 %v2686_v0 }
  0x86   : > { %2390 = vmatmul.mubr.msk.f32.gmra.mxu0 %vm261_vm0, %v2880_v24  ;;  %2410 = vmatmul.mubr.msk.f32.gmra.mxu1 %vm261_vm0, %v2880_v24 }
  0x87   : > { %872 = vmatprep.mubr.f32.mxu0 %v2686_v0  ;;  %1103 = vmatprep.mubr.f32.mxu1 %v2686_v0 }
  0x8a   : > { %2391 = vmatmul.mubr.msk.f32.gmra.mxu0 %vm261_vm0, %v2891_v25  ;;  %2411 = vmatmul.mubr.msk.f32.gmra.mxu1 %vm261_vm0, %v2891_v25 }
  0x8b   : > { %878 = vmatprep.mubr.f32.mxu0 %v2686_v0  ;;  %1109 = vmatprep.mubr.f32.mxu1 %v2686_v0 }
  0x8e   : > { %2392 = vmatmul.mubr.msk.f32.gmra.mxu0 %vm261_vm0, %v2902_v26  ;;  %2412 = vmatmul.mubr.msk.f32.gmra.mxu1 %vm261_vm0, %v2902_v26 }
  0x8f   : > { %884 = vmatprep.mubr.f32.mxu0 %v2686_v0  ;;  %1115 = vmatprep.mubr.f32.mxu1 %v2686_v0 }
  0x92   : > { %2393 = vmatmul.mubr.msk.f32.gmra.mxu0 %vm261_vm0, %v2913_v27  ;;  %2413 = vmatmul.mubr.msk.f32.gmra.mxu1 %vm261_vm0, %v2913_v27 }
  0x93   : > { %890 = vmatprep.mubr.f32.mxu0 %v2686_v0  ;;  %1121 = vmatprep.mubr.f32.mxu1 %v2686_v0 }
  0x96   : > { %2394 = vmatmul.mubr.msk.f32.gmra.mxu0 %vm261_vm0, %v2924_v28  ;;  %2414 = vmatmul.mubr.msk.f32.gmra.mxu1 %vm261_vm0, %v2924_v28 }
  0x97   : > { %896 = vmatprep.mubr.f32.mxu0 %v2686_v0  ;;  %1127 = vmatprep.mubr.f32.mxu1 %v2686_v0 }
  0x9a   : > { %2395 = vmatmul.mubr.msk.f32.gmra.mxu0 %vm261_vm0, %v2935_v29  ;;  %2415 = vmatmul.mubr.msk.f32.gmra.mxu1 %vm261_vm0, %v2935_v29 }
  0x9b   : > { %902 = vmatprep.mubr.f32.mxu0 %v2686_v0  ;;  %1133 = vmatprep.mubr.f32.mxu1 %v2686_v0 }
  0x9e   : > { %2396 = vmatmul.mubr.msk.f32.gmra.mxu0 %vm261_vm0, %v2946_v30  ;;  %2416 = vmatmul.mubr.msk.f32.gmra.mxu1 %vm261_vm0, %v2946_v30 }
  0x9f   : > { %908 = vmatprep.mubr.f32.mxu0 %v2686_v0  ;;  %1139 = vmatprep.mubr.f32.mxu1 %v2686_v0 }
  0xa2   : > { %2397 = vmatmul.mubr.msk.f32.gmra.mxu0 %vm261_vm0, %v2957_v31  ;;  %2417 = vmatmul.mubr.msk.f32.gmra.mxu1 %vm261_vm0, %v2957_v31 }
  0xa3   : > { %914 = vmatprep.mubr.f32.mxu0 %v2686_v0  ;;  %1145 = vmatprep.mubr.f32.mxu1 %v2686_v0 }
  0xa6   : > { %2398 = vmatmul.mubr.msk.f32.gmra.mxu0 %vm261_vm0, %v2968_v32  ;;  %2418 = vmatmul.mubr.msk.f32.gmra.mxu1 %vm261_vm0, %v2968_v32 }
  0xa7   : > { %920 = vmatprep.mubr.f32.mxu0 %v2686_v0  ;;  %1151 = vmatprep.mubr.f32.mxu1 %v2686_v0 }
  0xaa   : > { %2399 = vmatmul.mubr.msk.f32.gmra.mxu0 %vm261_vm0, %v2979_v33  ;;  %2419 = vmatmul.mubr.msk.f32.gmra.mxu1 %vm261_vm0, %v2979_v33 }
  0xab   : > { %926 = vmatprep.mubr.f32.mxu0 %v2686_v0  ;;  %1157 = vmatprep.mubr.f32.mxu1 %v2686_v0 }
  0xae   : > { %2400 = vmatmul.mubr.msk.f32.gmra.mxu0 %vm261_vm0, %v2990_v34  ;;  %2420 = vmatmul.mubr.msk.f32.gmra.mxu1 %vm261_vm0, %v2990_v34 }
  0xaf   : > { %1298 = vmatprep.mubr.f32.mxu0 %v2686_v0  ;;  %1529 = vmatprep.mubr.f32.mxu1 %v2686_v0 }
  0xb2   : > { %2425 = vmatmul.mubr.msk.f32.vlgmr.msra.gmra.mxu0 %vm261_vm0, %v2815_v9  ;;  %2445 = vmatmul.mubr.msk.f32.vlgmr.msra.gmra.mxu1 %vm261_vm0, %v2815_v9 }
  0xb3   : > { %1725 = vmatpush1.msra.mxu0 %v2463_v43  ;;  %1304 = vmatprep.mubr.f32.mxu0 %v2686_v0 }
  0xb4   : > { %1535 = vmatprep.mubr.f32.mxu1 %v2686_v0  ;;  %1956 = vmatpush1.msra.mxu1 %v2483_v44 }
  0xb5   : > { %1726 = vmatprep.subr.mxu0 %v2462_v45  ;;  %1957 = vmatprep.subr.mxu1 %v2482_v46 }
  0xb6   : > { %2426 = vmatmul.mubr.msk.f32.gmra.mxu0 %vm261_vm0, %v2828_v14  ;;  %2446 = vmatmul.mubr.msk.f32.gmra.mxu1 %vm261_vm0, %v2828_v14 }
  0xb7   : > { %1310 = vmatprep.mubr.f32.mxu0 %v2686_v0  ;;  %1541 = vmatprep.mubr.f32.mxu1 %v2686_v0 }
  0xb8   : > { %1727 = vmatpush1.msra.mxu0 %v2461_v47  ;;  %1958 = vmatpush1.msra.mxu1 %v2481_v48 }
  0xba   : > { %2427 = vmatmul.mubr.msk.f32.gmra.mxu0 %vm261_vm0, %v2845_v19  ;;  %2447 = vmatmul.mubr.msk.f32.gmra.mxu1 %vm261_vm0, %v2845_v19 }
  0xbb   : > { %1316 = vmatprep.mubr.f32.mxu0 %v2686_v0  ;;  %1547 = vmatprep.mubr.f32.mxu1 %v2686_v0 }
  0xbe   : > { %2428 = vmatmul.mubr.msk.f32.gmra.mxu0 %vm261_vm0, %v2858_v22  ;;  %2448 = vmatmul.mubr.msk.f32.gmra.mxu1 %vm261_vm0, %v2858_v22 }
  0xbf   : > { %1322 = vmatprep.mubr.f32.mxu0 %v2686_v0  ;;  %1553 = vmatprep.mubr.f32.mxu1 %v2686_v0 }
  0xc2   : > { %2429 = vmatmul.mubr.msk.f32.gmra.mxu0 %vm261_vm0, %v2869_v23  ;;  %2449 = vmatmul.mubr.msk.f32.gmra.mxu1 %vm261_vm0, %v2869_v23 }
  0xc3   : > { %1328 = vmatprep.mubr.f32.mxu0 %v2686_v0  ;;  %1559 = vmatprep.mubr.f32.mxu1 %v2686_v0 }
  0xc6   : > { %2430 = vmatmul.mubr.msk.f32.gmra.mxu0 %vm261_vm0, %v2880_v24  ;;  %2450 = vmatmul.mubr.msk.f32.gmra.mxu1 %vm261_vm0, %v2880_v24 }
  0xc7   : > { %1334 = vmatprep.mubr.f32.mxu0 %v2686_v0  ;;  %1565 = vmatprep.mubr.f32.mxu1 %v2686_v0 }
  0xca   : > { %2431 = vmatmul.mubr.msk.f32.gmra.mxu0 %vm261_vm0, %v2891_v25  ;;  %2451 = vmatmul.mubr.msk.f32.gmra.mxu1 %vm261_vm0, %v2891_v25 }
  0xcb   : > { %1340 = vmatprep.mubr.f32.mxu0 %v2686_v0  ;;  %1571 = vmatprep.mubr.f32.mxu1 %v2686_v0 }
  0xce   : > { %2432 = vmatmul.mubr.msk.f32.gmra.mxu0 %vm261_vm0, %v2902_v26  ;;  %2452 = vmatmul.mubr.msk.f32.gmra.mxu1 %vm261_vm0, %v2902_v26 }
  0xcf   : > { %1346 = vmatprep.mubr.f32.mxu0 %v2686_v0  ;;  %1577 = vmatprep.mubr.f32.mxu1 %v2686_v0 }
  0xd2   : > { %2433 = vmatmul.mubr.msk.f32.gmra.mxu0 %vm261_vm0, %v2913_v27  ;;  %2453 = vmatmul.mubr.msk.f32.gmra.mxu1 %vm261_vm0, %v2913_v27 }
  0xd3   : > { %1352 = vmatprep.mubr.f32.mxu0 %v2686_v0  ;;  %1583 = vmatprep.mubr.f32.mxu1 %v2686_v0 }
  0xd6   : > { %2434 = vmatmul.mubr.msk.f32.gmra.mxu0 %vm261_vm0, %v2924_v28  ;;  %2454 = vmatmul.mubr.msk.f32.gmra.mxu1 %vm261_vm0, %v2924_v28 }
  0xd7   : > { %1358 = vmatprep.mubr.f32.mxu0 %v2686_v0  ;;  %1589 = vmatprep.mubr.f32.mxu1 %v2686_v0 }
  0xda   : > { %2435 = vmatmul.mubr.msk.f32.gmra.mxu0 %vm261_vm0, %v2935_v29  ;;  %2455 = vmatmul.mubr.msk.f32.gmra.mxu1 %vm261_vm0, %v2935_v29 }
  0xdb   : > { %1364 = vmatprep.mubr.f32.mxu0 %v2686_v0  ;;  %1595 = vmatprep.mubr.f32.mxu1 %v2686_v0 }
  0xde   : > { %2436 = vmatmul.mubr.msk.f32.gmra.mxu0 %vm261_vm0, %v2946_v30  ;;  %2456 = vmatmul.mubr.msk.f32.gmra.mxu1 %vm261_vm0, %v2946_v30 }
  0xdf   : > { %1370 = vmatprep.mubr.f32.mxu0 %v2686_v0  ;;  %1601 = vmatprep.mubr.f32.mxu1 %v2686_v0 }
  0xe2   : > { %2437 = vmatmul.mubr.msk.f32.gmra.mxu0 %vm261_vm0, %v2957_v31  ;;  %2457 = vmatmul.mubr.msk.f32.gmra.mxu1 %vm261_vm0, %v2957_v31 }
  0xe3   : > { %1376 = vmatprep.mubr.f32.mxu0 %v2686_v0  ;;  %1607 = vmatprep.mubr.f32.mxu1 %v2686_v0 }
  0xe6   : > { %2438 = vmatmul.mubr.msk.f32.gmra.mxu0 %vm261_vm0, %v2968_v32  ;;  %2458 = vmatmul.mubr.msk.f32.gmra.mxu1 %vm261_vm0, %v2968_v32 }
  0xe7   : > { %1382 = vmatprep.mubr.f32.mxu0 %v2686_v0  ;;  %1613 = vmatprep.mubr.f32.mxu1 %v2686_v0 }
  0xea   : > { %2439 = vmatmul.mubr.msk.f32.gmra.mxu0 %vm261_vm0, %v2979_v33  ;;  %2459 = vmatmul.mubr.msk.f32.gmra.mxu1 %vm261_vm0, %v2979_v33 }
  0xeb   : > { %1388 = vmatprep.mubr.f32.mxu0 %v2686_v0  ;;  %1619 = vmatprep.mubr.f32.mxu1 %v2686_v0 }
  0xee   : > { %2440 = vmatmul.mubr.msk.f32.gmra.mxu0 %vm261_vm0, %v2990_v34  ;;  %2460 = vmatmul.mubr.msk.f32.gmra.mxu1 %vm261_vm0, %v2990_v34 }
  0xef   : > { %1760 = vmatprep.mubr.f32.mxu0 %v2686_v0  ;;  %1991 = vmatprep.mubr.f32.mxu1 %v2686_v0 }
  0xf2   : > { %v376_v49 = vpop.f32.mrf.mxu0  ;;  %v607_v50 = vpop.f32.mrf.mxu1  ;;  %2465 = vmatmul.mubr.msk.f32.vlgmr.msra.gmra.mxu0 %vm261_vm0, %v2815_v9  ;;  %2485 = vmatmul.mubr.msk.f32.vlgmr.msra.gmra.mxu1 %vm261_vm0, %v2815_v9 }
  0xf3   : > { %1766 = vmatprep.mubr.f32.mxu0 %v2686_v0  ;;  %1997 = vmatprep.mubr.f32.mxu1 %v2686_v0 }
  0xf4   : > { %v378_v51 = vpop.f32.mrf.mxu0  ;;  %v609_v52 = vpop.f32.mrf.mxu1 }
  0xf5   : > { %v471_v53 = vmax.f32 %v376_v49, %v378_v51  ;;  %v702_v59 = vmax.f32 %v607_v50, %v609_v52 }
  0xf6   : > { %v382_v54 = vpop.f32.mrf.mxu0  ;;  %v613_v55 = vpop.f32.mrf.mxu1  ;;  %2466 = vmatmul.mubr.msk.f32.gmra.mxu0 %vm261_vm0, %v2828_v14  ;;  %2486 = vmatmul.mubr.msk.f32.gmra.mxu1 %vm261_vm0, %v2828_v14 }
  0xf7   : > { %472 = vmax.xlane.f32.xlu0 %v471_v53  ;;  %1772 = vmatprep.mubr.f32.mxu0 %v2686_v0 }
  0xf8   : > { %v384_v56 = vpop.f32.mrf.mxu0  ;;  %v615_v57 = vpop.f32.mrf.mxu1  ;;  %2003 = vmatprep.mubr.f32.mxu1 %v2686_v0 }
  0xf9   : > { %v705_v58 = vmax.f32 %v613_v55, %v615_v57  ;;  %v474_v1 = vmax.f32 %v382_v54, %v384_v56 }
  0xfa   : > { %v388_v60 = vpop.f32.mrf.mxu0  ;;  %v619_v61 = vpop.f32.mrf.mxu1  ;;  %2467 = vmatmul.mubr.msk.f32.gmra.mxu0 %vm261_vm0, %v2845_v19  ;;  %2487 = vmatmul.mubr.msk.f32.gmra.mxu1 %vm261_vm0, %v2845_v19 }
  0xfb   : > { %706 = vmax.xlane.f32.xlu1 %v705_v58  ;;  %703 = vmax.xlane.f32.xlu0 %v702_v59 }
  0xfc   : > { %v390_v62 = vpop.f32.mrf.mxu0  ;;  %v621_v63 = vpop.f32.mrf.mxu1  ;;  %1778 = vmatprep.mubr.f32.mxu0 %v2686_v0  ;;  %2009 = vmatprep.mubr.f32.mxu1 %v2686_v0 }
  0xfd   : > { %v477_v2 = vmax.f32 %v388_v60, %v390_v62  ;;  %v708_v7 = vmax.f32 %v619_v61, %v621_v63 }
  0xfe   : > { %v394_v3 = vpop.f32.mrf.mxu0  ;;  %v625_v4 = vpop.f32.mrf.mxu1  ;;  %2468 = vmatmul.mubr.msk.f32.gmra.mxu0 %vm261_vm0, %v2858_v22  ;;  %2488 = vmatmul.mubr.msk.f32.gmra.mxu1 %vm261_vm0, %v2858_v22 }
  0xff   : > { %475 = vmax.xlane.f32.xlu0 %v474_v1  ;;  %478 = vmax.xlane.f32.xlu1 %v477_v2 }
 0x100   : > { %v396_v5 = vpop.f32.mrf.mxu0  ;;  %v627_v6 = vpop.f32.mrf.mxu1  ;;  %1784 = vmatprep.mubr.f32.mxu0 %v2686_v0  ;;  %2015 = vmatprep.mubr.f32.mxu1 %v2686_v0 }
 0x101   : > { %v480_v8 = vmax.f32 %v394_v3, %v396_v5  ;;  %v711_v13 = vmax.f32 %v625_v4, %v627_v6 }
 0x102   : > { %v400_v9 = vpop.f32.mrf.mxu0  ;;  %v631_v10 = vpop.f32.mrf.mxu1  ;;  %2469 = vmatmul.mubr.msk.f32.gmra.mxu0 %vm261_vm0, %v2869_v23  ;;  %2489 = vmatmul.mubr.msk.f32.gmra.mxu1 %vm261_vm0, %v2869_v23 }
 0x103   : > { %709 = vmax.xlane.f32.xlu0 %v708_v7  ;;  %481 = vmax.xlane.f32.xlu1 %v480_v8 }
 0x104   : > { %v402_v11 = vpop.f32.mrf.mxu0  ;;  %v633_v12 = vpop.f32.mrf.mxu1  ;;  %1790 = vmatprep.mubr.f32.mxu0 %v2686_v0  ;;  %2021 = vmatprep.mubr.f32.mxu1 %v2686_v0 }
 0x105   : > { %v483_v14 = vmax.f32 %v400_v9, %v402_v11  ;;  %v714_v19 = vmax.f32 %v631_v10, %v633_v12 }
 0x106   : > { %v406_v15 = vpop.f32.mrf.mxu0  ;;  %v637_v16 = vpop.f32.mrf.mxu1  ;;  %2470 = vmatmul.mubr.msk.f32.gmra.mxu0 %vm261_vm0, %v2880_v24  ;;  %2490 = vmatmul.mubr.msk.f32.gmra.mxu1 %vm261_vm0, %v2880_v24 }
 0x107   : > { %712 = vmax.xlane.f32.xlu1 %v711_v13  ;;  %484 = vmax.xlane.f32.xlu0 %v483_v14 }
 0x108   : > { %v408_v17 = vpop.f32.mrf.mxu0  ;;  %v639_v18 = vpop.f32.mrf.mxu1  ;;  %1796 = vmatprep.mubr.f32.mxu0 %v2686_v0  ;;  %2027 = vmatprep.mubr.f32.mxu1 %v2686_v0 }
 0x109   : > { %v486_v20 = vmax.f32 %v406_v15, %v408_v17  ;;  %v717_v35 = vmax.f32 %v637_v16, %v639_v18 }
 0x10a   : > { %v412_v21 = vpop.f32.mrf.mxu0  ;;  %v643_v22 = vpop.f32.mrf.mxu1  ;;  %2471 = vmatmul.mubr.msk.f32.gmra.mxu0 %vm261_vm0, %v2891_v25  ;;  %2491 = vmatmul.mubr.msk.f32.gmra.mxu1 %vm261_vm0, %v2891_v25 }
 0x10b   : > { %715 = vmax.xlane.f32.xlu0 %v714_v19  ;;  %487 = vmax.xlane.f32.xlu1 %v486_v20 }
 0x10c   : > { %v414_v23 = vpop.f32.mrf.mxu0  ;;  %v645_v24 = vpop.f32.mrf.mxu1  ;;  %1802 = vmatprep.mubr.f32.mxu0 %v2686_v0  ;;  %2033 = vmatprep.mubr.f32.mxu1 %v2686_v0 }
 0x10d   : > { %v489_v36 = vmax.f32 %v412_v21, %v414_v23  ;;  %v720_v40 = vmax.f32 %v643_v22, %v645_v24 }
 0x10e   : > { %v418_v37 = vpop.f32.mrf.mxu0  ;;  %v649_v38 = vpop.f32.mrf.mxu1  ;;  %2472 = vmatmul.mubr.msk.f32.gmra.mxu0 %vm261_vm0, %v2902_v26  ;;  %2492 = vmatmul.mubr.msk.f32.gmra.mxu1 %vm261_vm0, %v2902_v26 }
 0x10f   : > { %718 = vmax.xlane.f32.xlu1 %v717_v35  ;;  %490 = vmax.xlane.f32.xlu0 %v489_v36 }
 0x110   : > { %v420_v25 = vpop.f32.mrf.mxu0  ;;  %v651_v39 = vpop.f32.mrf.mxu1  ;;  %1808 = vmatprep.mubr.f32.mxu0 %v2686_v0  ;;  %2039 = vmatprep.mubr.f32.mxu1 %v2686_v0 }
 0x111   : > { %v492_v41 = vmax.f32 %v418_v37, %v420_v25  ;;  %v723_v46 = vmax.f32 %v649_v38, %v651_v39 }
 0x112   : > { %v424_v42 = vpop.f32.mrf.mxu0  ;;  %v655_v43 = vpop.f32.mrf.mxu1  ;;  %2473 = vmatmul.mubr.msk.f32.gmra.mxu0 %vm261_vm0, %v2913_v27  ;;  %2493 = vmatmul.mubr.msk.f32.gmra.mxu1 %vm261_vm0, %v2913_v27 }
 0x113   : > { %721 = vmax.xlane.f32.xlu0 %v720_v40  ;;  %493 = vmax.xlane.f32.xlu1 %v492_v41 }
 0x114   : > { %v426_v26 = vpop.f32.mrf.mxu0  ;;  %v657_v44 = vpop.f32.mrf.mxu1  ;;  %1814 = vmatprep.mubr.f32.mxu0 %v2686_v0  ;;  %2045 = vmatprep.mubr.f32.mxu1 %v2686_v0 }
 0x115   : > { %v495_v45 = vmax.f32 %v424_v42, %v426_v26  ;;  %v726_v50 = vmax.f32 %v655_v43, %v657_v44 }
 0x116   : > { %v430_v47 = vpop.f32.mrf.mxu0  ;;  %v661_v48 = vpop.f32.mrf.mxu1  ;;  %2474 = vmatmul.mubr.msk.f32.gmra.mxu0 %vm261_vm0, %v2924_v28  ;;  %2494 = vmatmul.mubr.msk.f32.gmra.mxu1 %vm261_vm0, %v2924_v28 }
 0x117   : > { %724 = vmax.xlane.f32.xlu1 %v723_v46  ;;  %496 = vmax.xlane.f32.xlu0 %v495_v45 }
 0x118   : > { %v432_v27 = vpop.f32.mrf.mxu0  ;;  %v663_v49 = vpop.f32.mrf.mxu1  ;;  %1820 = vmatprep.mubr.f32.mxu0 %v2686_v0  ;;  %2051 = vmatprep.mubr.f32.mxu1 %v2686_v0 }
 0x119   : > { %v498_v51 = vmax.f32 %v430_v47, %v432_v27  ;;  %v729_v55 = vmax.f32 %v661_v48, %v663_v49 }
 0x11a   : > { %v436_v52 = vpop.f32.mrf.mxu0  ;;  %v667_v53 = vpop.f32.mrf.mxu1  ;;  %2475 = vmatmul.mubr.msk.f32.gmra.mxu0 %vm261_vm0, %v2935_v29  ;;  %2495 = vmatmul.mubr.msk.f32.gmra.mxu1 %vm261_vm0, %v2935_v29 }
 0x11b   : > { %727 = vmax.xlane.f32.xlu0 %v726_v50  ;;  %499 = vmax.xlane.f32.xlu1 %v498_v51 }
 0x11c   : > { %v438_v28 = vpop.f32.mrf.mxu0  ;;  %v669_v54 = vpop.f32.mrf.mxu1  ;;  %1826 = vmatprep.mubr.f32.mxu0 %v2686_v0  ;;  %2057 = vmatprep.mubr.f32.mxu1 %v2686_v0 }
 0x11d   : > { %v501_v56 = vmax.f32 %v436_v52, %v438_v28  ;;  %v732_v60 = vmax.f32 %v667_v53, %v669_v54 }
 0x11e   : > { %v442_v57 = vpop.f32.mrf.mxu0  ;;  %v673_v58 = vpop.f32.mrf.mxu1  ;;  %2476 = vmatmul.mubr.msk.f32.gmra.mxu0 %vm261_vm0, %v2946_v30  ;;  %2496 = vmatmul.mubr.msk.f32.gmra.mxu1 %vm261_vm0, %v2946_v30 }
 0x11f   : > { %730 = vmax.xlane.f32.xlu1 %v729_v55  ;;  %502 = vmax.xlane.f32.xlu0 %v501_v56 }
 0x120   : > { %v444_v29 = vpop.f32.mrf.mxu0  ;;  %v675_v59 = vpop.f32.mrf.mxu1  ;;  %1832 = vmatprep.mubr.f32.mxu0 %v2686_v0  ;;  %2063 = vmatprep.mubr.f32.mxu1 %v2686_v0 }
 0x121   : > { %v504_v61 = vmax.f32 %v442_v57, %v444_v29  ;;  %v735_v2 = vmax.f32 %v673_v58, %v675_v59 }
 0x122   : > { %v448_v62 = vpop.f32.mrf.mxu0  ;;  %v679_v63 = vpop.f32.mrf.mxu1  ;;  %2477 = vmatmul.mubr.msk.f32.gmra.mxu0 %vm261_vm0, %v2957_v31  ;;  %2497 = vmatmul.mubr.msk.f32.gmra.mxu1 %vm261_vm0, %v2957_v31 }
 0x123   : > { %733 = vmax.xlane.f32.xlu0 %v732_v60  ;;  %505 = vmax.xlane.f32.xlu1 %v504_v61 }
 0x124   : > { %v450_v30 = vpop.f32.mrf.mxu0  ;;  %v681_v1 = vpop.f32.mrf.mxu1  ;;  %1838 = vmatprep.mubr.f32.mxu0 %v2686_v0  ;;  %2069 = vmatprep.mubr.f32.mxu1 %v2686_v0 }
 0x125   : > { %v507_v3 = vmax.f32 %v448_v62, %v450_v30  ;;  %v738_v7 = vmax.f32 %v679_v63, %v681_v1 }
 0x126   : > { %v454_v4 = vpop.f32.mrf.mxu0  ;;  %v685_v5 = vpop.f32.mrf.mxu1  ;;  %2478 = vmatmul.mubr.msk.f32.gmra.mxu0 %vm261_vm0, %v2968_v32  ;;  %2498 = vmatmul.mubr.msk.f32.gmra.mxu1 %vm261_vm0, %v2968_v32 }
 0x127   : > { %736 = vmax.xlane.f32.xlu1 %v735_v2  ;;  %508 = vmax.xlane.f32.xlu0 %v507_v3 }
 0x128   : > { %v456_v31 = vpop.f32.mrf.mxu0  ;;  %v687_v6 = vpop.f32.mrf.mxu1  ;;  %1844 = vmatprep.mubr.f32.mxu0 %v2686_v0  ;;  %2075 = vmatprep.mubr.f32.mxu1 %v2686_v0 }
 0x129   : > { %v510_v8 = vmax.f32 %v454_v4, %v456_v31  ;;  %v741_v12 = vmax.f32 %v685_v5, %v687_v6 }
 0x12a   : > { %v460_v9 = vpop.f32.mrf.mxu0  ;;  %v691_v10 = vpop.f32.mrf.mxu1  ;;  %2479 = vmatmul.mubr.msk.f32.gmra.mxu0 %vm261_vm0, %v2979_v33  ;;  %2499 = vmatmul.mubr.msk.f32.gmra.mxu1 %vm261_vm0, %v2979_v33 }
 0x12b   : > { %739 = vmax.xlane.f32.xlu0 %v738_v7  ;;  %511 = vmax.xlane.f32.xlu1 %v510_v8 }
 0x12c   : > { %v462_v32 = vpop.f32.mrf.mxu0  ;;  %v693_v11 = vpop.f32.mrf.mxu1  ;;  %1850 = vmatprep.mubr.f32.mxu0 %v2686_v0  ;;  %2081 = vmatprep.mubr.f32.mxu1 %v2686_v0 }
 0x12d   : > { %v513_v13 = vmax.f32 %v460_v9, %v462_v32  ;;  %v744_v17 = vmax.f32 %v691_v10, %v693_v11 }
 0x12e   : > { %v466_v14 = vpop.f32.mrf.mxu0  ;;  %v697_v15 = vpop.f32.mrf.mxu1  ;;  %2480 = vmatmul.mubr.msk.f32.gmra.mxu0 %vm261_vm0, %v2990_v34  ;;  %2500 = vmatmul.mubr.msk.f32.gmra.mxu1 %vm261_vm0, %v2990_v34 }
 0x12f   : > { %742 = vmax.xlane.f32.xlu1 %v741_v12  ;;  %514 = vmax.xlane.f32.xlu0 %v513_v13 }
 0x130   : > { %v468_v33 = vpop.f32.mrf.mxu0  ;;  %v699_v16 = vpop.f32.mrf.mxu1 }
 0x131   : > { %v516_v18 = vmax.f32 %v466_v14, %v468_v33  ;;  %v747_v22 = vmax.f32 %v697_v15, %v699_v16 }
 0x132   : > { %v838_v19 = vpop.f32.mrf.mxu0  ;;  %v1069_v20 = vpop.f32.mrf.mxu1 }
 0x133   : > { %745 = vmax.xlane.f32.xlu0 %v744_v17  ;;  %517 = vmax.xlane.f32.xlu1 %v516_v18 }
 0x134   : > { %v840_v0 = vpop.f32.mrf.mxu0  ;;  %v1071_v21 = vpop.f32.mrf.mxu1 }
 0x135   : > { %v933_v23 = vmax.f32 %v838_v19, %v840_v0  ;;  %v1164_v37 = vmax.f32 %v1069_v20, %v1071_v21 }
 0x136   : > { %v844_v24 = vpop.f32.mrf.mxu0  ;;  %v1075_v35 = vpop.f32.mrf.mxu1 }
 0x137   : > { %934 = vmax.xlane.f32.xlu0 %v933_v23  ;;  %748 = vmax.xlane.f32.xlu1 %v747_v22 }
 0x138   : > { %v846_v36 = vpop.f32.mrf.mxu0  ;;  %v1077_v34 = vpop.f32.mrf.mxu1 }
 0x139   : > { %v936_v38 = vmax.f32 %v844_v24, %v846_v36  ;;  %v1167_v42 = vmax.f32 %v1075_v35, %v1077_v34 }
 0x13a   : > { %v850_v25 = vpop.f32.mrf.mxu0  ;;  %v1081_v39 = vpop.f32.mrf.mxu1 }
 0x13b   : > { %1165 = vmax.xlane.f32.xlu0 %v1164_v37  ;;  %937 = vmax.xlane.f32.xlu1 %v936_v38 }
 0x13c   : > { %v852_v40 = vpop.f32.mrf.mxu0  ;;  %v1083_v41 = vpop.f32.mrf.mxu1 }
 0x13d   : > { %v939_v43 = vmax.f32 %v850_v25, %v852_v40  ;;  %v1170_v47 = vmax.f32 %v1081_v39, %v1083_v41 }
 0x13e   : > { %v856_v26 = vpop.f32.mrf.mxu0  ;;  %v1087_v44 = vpop.f32.mrf.mxu1 }
 0x13f   : > { %940 = vmax.xlane.f32.xlu0 %v939_v43  ;;  %1168 = vmax.xlane.f32.xlu1 %v1167_v42 }
 0x140   : > { %v858_v45 = vpop.f32.mrf.mxu0  ;;  %v1089_v46 = vpop.f32.mrf.mxu1 }
 0x141   : > { %v942_v48 = vmax.f32 %v856_v26, %v858_v45  ;;  %v1173_v52 = vmax.f32 %v1087_v44, %v1089_v46 }
 0x142   : > { %v862_v27 = vpop.f32.mrf.mxu0  ;;  %v1093_v49 = vpop.f32.mrf.mxu1 }
 0x143   : > { %1171 = vmax.xlane.f32.xlu0 %v1170_v47  ;;  %943 = vmax.xlane.f32.xlu1 %v942_v48 }
 0x144   : > { %v864_v50 = vpop.f32.mrf.mxu0  ;;  %v1095_v51 = vpop.f32.mrf.mxu1 }
 0x145   : > { %v945_v53 = vmax.f32 %v862_v27, %v864_v50  ;;  %v1176_v57 = vmax.f32 %v1093_v49, %v1095_v51 }
 0x146   : > { %v868_v28 = vpop.f32.mrf.mxu0  ;;  %v1099_v54 = vpop.f32.mrf.mxu1 }
 0x147   : > { %946 = vmax.xlane.f32.xlu0 %v945_v53  ;;  %1174 = vmax.xlane.f32.xlu1 %v1173_v52 }
 0x148   : > { %v870_v55 = vpop.f32.mrf.mxu0  ;;  %v1101_v56 = vpop.f32.mrf.mxu1 }
 0x149   : > { %v948_v58 = vmax.f32 %v868_v28, %v870_v55  ;;  %v1179_v62 = vmax.f32 %v1099_v54, %v1101_v56 }
 0x14a   : > { %v874_v29 = vpop.f32.mrf.mxu0  ;;  %v1105_v59 = vpop.f32.mrf.mxu1 }
 0x14b   : > { %1177 = vmax.xlane.f32.xlu0 %v1176_v57  ;;  %949 = vmax.xlane.f32.xlu1 %v948_v58 }
 0x14c   : > { %v876_v60 = vpop.f32.mrf.mxu0  ;;  %v1107_v61 = vpop.f32.mrf.mxu1 }
 0x14d   : > { %v951_v63 = vmax.f32 %v874_v29, %v876_v60  ;;  %v1182_v4 = vmax.f32 %v1105_v59, %v1107_v61 }
 0x14e   : > { %v880_v30 = vpop.f32.mrf.mxu0  ;;  %v1111_v1 = vpop.f32.mrf.mxu1 }
 0x14f   : > { %952 = vmax.xlane.f32.xlu0 %v951_v63  ;;  %1180 = vmax.xlane.f32.xlu1 %v1179_v62 }
 0x150   : > { %v882_v2 = vpop.f32.mrf.mxu0  ;;  %v1113_v3 = vpop.f32.mrf.mxu1 }
 0x151   : > { %v954_v5 = vmax.f32 %v880_v30, %v882_v2  ;;  %v1185_v9 = vmax.f32 %v1111_v1, %v1113_v3 }
 0x152   : > { %v886_v31 = vpop.f32.mrf.mxu0  ;;  %v1117_v6 = vpop.f32.mrf.mxu1 }
 0x153   : > { %1183 = vmax.xlane.f32.xlu0 %v1182_v4  ;;  %955 = vmax.xlane.f32.xlu1 %v954_v5 }
 0x154   : > { %v888_v7 = vpop.f32.mrf.mxu0  ;;  %v1119_v8 = vpop.f32.mrf.mxu1 }
 0x155   : > { %v957_v10 = vmax.f32 %v886_v31, %v888_v7  ;;  %v1188_v14 = vmax.f32 %v1117_v6, %v1119_v8 }
 0x156   : > { %v892_v32 = vpop.f32.mrf.mxu0  ;;  %v1123_v11 = vpop.f32.mrf.mxu1 }
 0x157   : > { %958 = vmax.xlane.f32.xlu0 %v957_v10  ;;  %1186 = vmax.xlane.f32.xlu1 %v1185_v9 }
 0x158   : > { %v894_v12 = vpop.f32.mrf.mxu0  ;;  %v1125_v13 = vpop.f32.mrf.mxu1 }
 0x159   : > { %v960_v15 = vmax.f32 %v892_v32, %v894_v12  ;;  %v1191_v19 = vmax.f32 %v1123_v11, %v1125_v13 }
 0x15a   : > { %v898_v33 = vpop.f32.mrf.mxu0  ;;  %v1129_v16 = vpop.f32.mrf.mxu1 }
 0x15b   : > { %1189 = vmax.xlane.f32.xlu0 %v1188_v14  ;;  %961 = vmax.xlane.f32.xlu1 %v960_v15 }
 0x15c   : > { %v900_v17 = vpop.f32.mrf.mxu0  ;;  %v1131_v18 = vpop.f32.mrf.mxu1 }
 0x15d   : > { %v963_v20 = vmax.f32 %v898_v33, %v900_v17  ;;  %v1194_v24 = vmax.f32 %v1129_v16, %v1131_v18 }
 0x15e   : > { %v904_v0 = vpop.f32.mrf.mxu0  ;;  %v1135_v21 = vpop.f32.mrf.mxu1 }
 0x15f   : > { %964 = vmax.xlane.f32.xlu0 %v963_v20  ;;  %1192 = vmax.xlane.f32.xlu1 %v1191_v19 }
 0x160   : > { %v906_v22 = vpop.f32.mrf.mxu0  ;;  %v1137_v23 = vpop.f32.mrf.mxu1 }
 0x161   : > { %v966_v35 = vmax.f32 %v904_v0, %v906_v22  ;;  %v1197_v25 = vmax.f32 %v1135_v21, %v1137_v23 }
 0x162   : > { %v910_v36 = vpop.f32.mrf.mxu0  ;;  %v1141_v34 = vpop.f32.mrf.mxu1 }
 0x163   : > { %1195 = vmax.xlane.f32.xlu0 %v1194_v24  ;;  %967 = vmax.xlane.f32.xlu1 %v966_v35 }
 0x164   : > { %v912_v37 = vpop.f32.mrf.mxu0  ;;  %v1143_v38 = vpop.f32.mrf.mxu1 }
 0x165   : > { %v969_v39 = vmax.f32 %v910_v36, %v912_v37  ;;  %v1200_v26 = vmax.f32 %v1141_v34, %v1143_v38 }
 0x166   : > { %v916_v40 = vpop.f32.mrf.mxu0  ;;  %v1147_v41 = vpop.f32.mrf.mxu1 }
 0x167   : > { %970 = vmax.xlane.f32.xlu0 %v969_v39  ;;  %1198 = vmax.xlane.f32.xlu1 %v1197_v25 }
 0x168   : > { %v918_v42 = vpop.f32.mrf.mxu0  ;;  %v1149_v43 = vpop.f32.mrf.mxu1 }
 0x169   : > { %v972_v44 = vmax.f32 %v916_v40, %v918_v42  ;;  %v1203_v27 = vmax.f32 %v1147_v41, %v1149_v43 }
 0x16a   : > { %v922_v45 = vpop.f32.mrf.mxu0  ;;  %v1153_v46 = vpop.f32.mrf.mxu1 }
 0x16b   : > { %1201 = vmax.xlane.f32.xlu0 %v1200_v26  ;;  %973 = vmax.xlane.f32.xlu1 %v972_v44 }
 0x16c   : > { %v924_v47 = vpop.f32.mrf.mxu0  ;;  %v1155_v48 = vpop.f32.mrf.mxu1 }
 0x16d   : > { %v975_v49 = vmax.f32 %v922_v45, %v924_v47  ;;  %v1206_v28 = vmax.f32 %v1153_v46, %v1155_v48 }
 0x16e   : > { %v928_v50 = vpop.f32.mrf.mxu0  ;;  %v1159_v51 = vpop.f32.mrf.mxu1 }
 0x16f   : > { %976 = vmax.xlane.f32.xlu0 %v975_v49  ;;  %1204 = vmax.xlane.f32.xlu1 %v1203_v27 }
 0x170   : > { %v930_v52 = vpop.f32.mrf.mxu0  ;;  %v1161_v53 = vpop.f32.mrf.mxu1 }
 0x171   : > { %v978_v54 = vmax.f32 %v928_v50, %v930_v52  ;;  %v1209_v29 = vmax.f32 %v1159_v51, %v1161_v53 }
 0x172   : > { %v1300_v55 = vpop.f32.mrf.mxu0  ;;  %v1531_v56 = vpop.f32.mrf.mxu1 }
 0x173   : > { %1207 = vmax.xlane.f32.xlu0 %v1206_v28  ;;  %979 = vmax.xlane.f32.xlu1 %v978_v54 }
 0x174   : > { %v1302_v57 = vpop.f32.mrf.mxu0  ;;  %v1533_v58 = vpop.f32.mrf.mxu1 }
 0x175   : > { %v1395_v59 = vmax.f32 %v1300_v55, %v1302_v57  ;;  %v1626_v30 = vmax.f32 %v1531_v56, %v1533_v58 }
 0x176   : > { %v1306_v60 = vpop.f32.mrf.mxu0  ;;  %v1537_v61 = vpop.f32.mrf.mxu1 }
 0x177   : > { %1396 = vmax.xlane.f32.xlu0 %v1395_v59  ;;  %1210 = vmax.xlane.f32.xlu1 %v1209_v29 }
 0x178   : > { %v1308_v62 = vpop.f32.mrf.mxu0  ;;  %v1539_v63 = vpop.f32.mrf.mxu1 }
 0x179   : > { %v1398_v1 = vmax.f32 %v1306_v60, %v1308_v62  ;;  %v1629_v31 = vmax.f32 %v1537_v61, %v1539_v63 }
 0x17a   : > { %v1312_v2 = vpop.f32.mrf.mxu0  ;;  %v1543_v3 = vpop.f32.mrf.mxu1 }
 0x17b   : > { %1627 = vmax.xlane.f32.xlu0 %v1626_v30  ;;  %1399 = vmax.xlane.f32.xlu1 %v1398_v1 }
 0x17c   : > { %v1314_v4 = vpop.f32.mrf.mxu0  ;;  %v1545_v5 = vpop.f32.mrf.mxu1 }
 0x17d   : > { %v1632_v6 = vmax.f32 %v1543_v3, %v1545_v5  ;;  %v1401_v32 = vmax.f32 %v1312_v2, %v1314_v4 }
 0x17e   : > { %v1318_v7 = vpop.f32.mrf.mxu0  ;;  %v1549_v8 = vpop.f32.mrf.mxu1 }
 0x17f   : > { %1630 = vmax.xlane.f32.xlu0 %v1629_v31  ;;  %1633 = vmax.xlane.f32.xlu1 %v1632_v6 }
 0x180   : > { %v1551_v9 = vpop.f32.mrf.mxu1  ;;  %v473_v10 = vpop.xlane.xlu0 %472 }
 0x181   : > { %520 = vst.msk [vmem:[#allocation2] sm:$0xff] %vm519_vm1, %v473_v10  ;;  %v1320_v11 = vpop.f32.mrf.mxu0  ;;  %v1635_v16 = vmax.f32 %v1549_v8, %v1551_v9 }
 0x182   : > { %v1404_v12 = vmax.f32 %v1318_v7, %v1320_v11  ;;  %v1555_v13 = vpop.f32.mrf.mxu1 }
 0x183   : > { %v1324_v14 = vpop.f32.mrf.mxu0  ;;  %1402 = vmax.xlane.f32.xlu0 %v1401_v32 }
 0x184   : > { %1405 = vmax.xlane.f32.xlu1 %v1404_v12  ;;  %v707_v15 = vpop.xlane.xlu1 %706  ;;  %v1557_v33 = vpop.f32.mrf.mxu1 }
 0x185   : > { %v1638_v17 = vmax.f32 %v1555_v13, %v1557_v33  ;;  %v704_v18 = vpop.xlane.xlu0 %703  ;;  %v1326_v19 = vpop.f32.mrf.mxu0 }
 0x186   : > { %751 = vst.msk [vmem:[#allocation2] sm:$0xff] %vm750_vm2, %v704_v18  ;;  %v1561_v20 = vpop.f32.mrf.mxu1  ;;  %v1407_v23 = vmax.f32 %v1324_v14, %v1326_v19 }
 0x187   : > { %v1330_v0 = vpop.f32.mrf.mxu0  ;;  %1636 = vmax.xlane.f32.xlu0 %v1635_v16 }
 0x188   : > { %1639 = vmax.xlane.f32.xlu1 %v1638_v17  ;;  %v1563_v21 = vpop.f32.mrf.mxu1  ;;  %v479_v22 = vpop.xlane.xlu1 %478 }
 0x189   : > { %v476_v24 = vpop.xlane.xlu0 %475  ;;  %522 = vst.msk [vmem:[#allocation2 + $0x10] sm:$0xff] %vm519_vm1, %v479_v22  ;;  %v1332_v35 = vpop.f32.mrf.mxu0  ;;  %v1641_v39 = vmax.f32 %v1561_v20, %v1563_v21 }
 0x18a   : > { %521 = vst.msk [vmem:[#allocation2 + $0x8] sm:$0xff] %vm519_vm1, %v476_v24  ;;  %v1410_v36 = vmax.f32 %v1330_v0, %v1332_v35  ;;  %v1567_v34 = vpop.f32.mrf.mxu1 }
 0x18b   : > { %752 = vst.msk [vmem:[#allocation2 + $0x8] sm:$0xff] %vm750_vm2, %v707_v15  ;;  %v1336_v37 = vpop.f32.mrf.mxu0  ;;  %1408 = vmax.xlane.f32.xlu0 %v1407_v23 }
 0x18c   : > { %1411 = vmax.xlane.f32.xlu1 %v1410_v36  ;;  %v1569_v38 = vpop.f32.mrf.mxu1  ;;  %v482_v25 = vpop.xlane.xlu1 %481 }
 0x18d   : > { %v1644_v40 = vmax.f32 %v1567_v34, %v1569_v38  ;;  %v710_v41 = vpop.xlane.xlu0 %709  ;;  %523 = vst.msk [vmem:[#allocation2 + $0x18] sm:$0xff] %vm519_vm1, %v482_v25  ;;  %v1338_v42 = vpop.f32.mrf.mxu0 }
 0x18e   : > { %753 = vst.msk [vmem:[#allocation2 + $0x10] sm:$0xff] %vm750_vm2, %v710_v41  ;;  %v1573_v43 = vpop.f32.mrf.mxu1  ;;  %v1413_v46 = vmax.f32 %v1336_v37, %v1338_v42 }
 0x18f   : > { %v1342_v26 = vpop.f32.mrf.mxu0  ;;  %1642 = vmax.xlane.f32.xlu0 %v1641_v39 }
 0x190   : > { %1645 = vmax.xlane.f32.xlu1 %v1644_v40  ;;  %v1575_v44 = vpop.f32.mrf.mxu1  ;;  %v713_v45 = vpop.xlane.xlu1 %712 }
 0x191   : > { %754 = vst.msk [vmem:[#allocation2 + $0x18] sm:$0xff] %vm750_vm2, %v713_v45  ;;  %v485_v47 = vpop.xlane.xlu0 %484  ;;  %v1344_v48 = vpop.f32.mrf.mxu0  ;;  %v1647_v53 = vmax.f32 %v1573_v43, %v1575_v44 }
 0x192   : > { %524 = vst.msk [vmem:[#allocation2 + $0x20] sm:$0xff] %vm519_vm1, %v485_v47  ;;  %v1416_v27 = vmax.f32 %v1342_v26, %v1344_v48  ;;  %v1579_v49 = vpop.f32.mrf.mxu1 }
 0x193   : > { %v1348_v50 = vpop.f32.mrf.mxu0  ;;  %1414 = vmax.xlane.f32.xlu0 %v1413_v46 }
 0x194   : > { %1417 = vmax.xlane.f32.xlu1 %v1416_v27  ;;  %v1581_v51 = vpop.f32.mrf.mxu1  ;;  %v488_v52 = vpop.xlane.xlu1 %487 }
 0x195   : > { %v1650_v28 = vmax.f32 %v1579_v49, %v1581_v51  ;;  %v716_v54 = vpop.xlane.xlu0 %715  ;;  %525 = vst.msk [vmem:[#allocation2 + $0x28] sm:$0xff] %vm519_vm1, %v488_v52  ;;  %v1350_v55 = vpop.f32.mrf.mxu0 }
 0x196   : > { %755 = vst.msk [vmem:[#allocation2 + $0x20] sm:$0xff] %vm750_vm2, %v716_v54  ;;  %v1585_v56 = vpop.f32.mrf.mxu1  ;;  %v1419_v59 = vmax.f32 %v1348_v50, %v1350_v55 }
 0x197   : > { %v1354_v57 = vpop.f32.mrf.mxu0  ;;  %1648 = vmax.xlane.f32.xlu0 %v1647_v53 }
 0x198   : > { %1651 = vmax.xlane.f32.xlu1 %v1650_v28  ;;  %v1587_v58 = vpop.f32.mrf.mxu1  ;;  %v719_v29 = vpop.xlane.xlu1 %718 }
 0x199   : > { %756 = vst.msk [vmem:[#allocation2 + $0x28] sm:$0xff] %vm750_vm2, %v719_v29  ;;  %v491_v60 = vpop.xlane.xlu0 %490  ;;  %v1356_v61 = vpop.f32.mrf.mxu0  ;;  %v1653_v3 = vmax.f32 %v1585_v56, %v1587_v58 }
 0x19a   : > { %526 = vst.msk [vmem:[#allocation2 + $0x30] sm:$0xff] %vm519_vm1, %v491_v60  ;;  %v1422_v62 = vmax.f32 %v1354_v57, %v1356_v61  ;;  %v1591_v63 = vpop.f32.mrf.mxu1 }
 0x19b   : > { %v1360_v30 = vpop.f32.mrf.mxu0  ;;  %1420 = vmax.xlane.f32.xlu0 %v1419_v59 }
 0x19c   : > { %1423 = vmax.xlane.f32.xlu1 %v1422_v62  ;;  %v1593_v1 = vpop.f32.mrf.mxu1  ;;  %v494_v2 = vpop.xlane.xlu1 %493 }
 0x19d   : > { %v1656_v4 = vmax.f32 %v1591_v63, %v1593_v1  ;;  %v722_v5 = vpop.xlane.xlu0 %721  ;;  %527 = vst.msk [vmem:[#allocation2 + $0x38] sm:$0xff] %vm519_vm1, %v494_v2  ;;  %v1362_v31 = vpop.f32.mrf.mxu0 }
 0x19e   : > { %757 = vst.msk [vmem:[#allocation2 + $0x30] sm:$0xff] %vm750_vm2, %v722_v5  ;;  %v1597_v6 = vpop.f32.mrf.mxu1  ;;  %v1425_v10 = vmax.f32 %v1360_v30, %v1362_v31 }
 0x19f   : > { %v1366_v7 = vpop.f32.mrf.mxu0  ;;  %1654 = vmax.xlane.f32.xlu0 %v1653_v3 }
 0x1a0   : > { %1657 = vmax.xlane.f32.xlu1 %v1656_v4  ;;  %v1599_v8 = vpop.f32.mrf.mxu1  ;;  %v725_v9 = vpop.xlane.xlu1 %724 }
 0x1a1   : > { %758 = vst.msk [vmem:[#allocation2 + $0x38] sm:$0xff] %vm750_vm2, %v725_v9  ;;  %v497_v32 = vpop.xlane.xlu0 %496  ;;  %v1368_v11 = vpop.f32.mrf.mxu0  ;;  %v1659_v16 = vmax.f32 %v1597_v6, %v1599_v8 }
 0x1a2   : > { %528 = vst.msk [vmem:[#allocation2 + $0x40] sm:$0xff] %vm519_vm1, %v497_v32  ;;  %v1428_v12 = vmax.f32 %v1366_v7, %v1368_v11  ;;  %v1603_v13 = vpop.f32.mrf.mxu1 }
 0x1a3   : > { %v1372_v14 = vpop.f32.mrf.mxu0  ;;  %1426 = vmax.xlane.f32.xlu0 %v1425_v10 }
 0x1a4   : > { %1429 = vmax.xlane.f32.xlu1 %v1428_v12  ;;  %v1605_v15 = vpop.f32.mrf.mxu1  ;;  %v500_v33 = vpop.xlane.xlu1 %499 }
 0x1a5   : > { %v1662_v17 = vmax.f32 %v1603_v13, %v1605_v15  ;;  %v728_v18 = vpop.xlane.xlu0 %727  ;;  %529 = vst.msk [vmem:[#allocation2 + $0x48] sm:$0xff] %vm519_vm1, %v500_v33  ;;  %v1374_v19 = vpop.f32.mrf.mxu0 }
 0x1a6   : > { %759 = vst.msk [vmem:[#allocation2 + $0x40] sm:$0xff] %vm750_vm2, %v728_v18  ;;  %v1609_v20 = vpop.f32.mrf.mxu1  ;;  %v1431_v23 = vmax.f32 %v1372_v14, %v1374_v19 }
 0x1a7   : > { %v1378_v0 = vpop.f32.mrf.mxu0  ;;  %1660 = vmax.xlane.f32.xlu0 %v1659_v16 }
 0x1a8   : > { %1663 = vmax.xlane.f32.xlu1 %v1662_v17  ;;  %v1611_v21 = vpop.f32.mrf.mxu1  ;;  %v731_v22 = vpop.xlane.xlu1 %730 }
 0x1a9   : > { %760 = vst.msk [vmem:[#allocation2 + $0x48] sm:$0xff] %vm750_vm2, %v731_v22  ;;  %v503_v24 = vpop.xlane.xlu0 %502  ;;  %v1380_v35 = vpop.f32.mrf.mxu0  ;;  %v1665_v39 = vmax.f32 %v1609_v20, %v1611_v21 }
 0x1aa   : > { %530 = vst.msk [vmem:[#allocation2 + $0x50] sm:$0xff] %vm519_vm1, %v503_v24  ;;  %v1434_v36 = vmax.f32 %v1378_v0, %v1380_v35  ;;  %v1615_v34 = vpop.f32.mrf.mxu1 }
 0x1ab   : > { %v1384_v37 = vpop.f32.mrf.mxu0  ;;  %1432 = vmax.xlane.f32.xlu0 %v1431_v23 }
 0x1ac   : > { %1435 = vmax.xlane.f32.xlu1 %v1434_v36  ;;  %v1617_v38 = vpop.f32.mrf.mxu1  ;;  %v506_v25 = vpop.xlane.xlu1 %505 }
 0x1ad   : > { %v1668_v40 = vmax.f32 %v1615_v34, %v1617_v38  ;;  %v734_v41 = vpop.xlane.xlu0 %733  ;;  %531 = vst.msk [vmem:[#allocation2 + $0x58] sm:$0xff] %vm519_vm1, %v506_v25  ;;  %v1386_v42 = vpop.f32.mrf.mxu0 }
 0x1ae   : > { %761 = vst.msk [vmem:[#allocation2 + $0x50] sm:$0xff] %vm750_vm2, %v734_v41  ;;  %v1621_v43 = vpop.f32.mrf.mxu1  ;;  %v1437_v46 = vmax.f32 %v1384_v37, %v1386_v42 }
 0x1af   : > { %v1390_v26 = vpop.f32.mrf.mxu0  ;;  %1666 = vmax.xlane.f32.xlu0 %v1665_v39 }
 0x1b0   : > { %1669 = vmax.xlane.f32.xlu1 %v1668_v40  ;;  %v737_v44 = vpop.xlane.xlu1 %736  ;;  %v1623_v45 = vpop.f32.mrf.mxu1 }
 0x1b1   : > { %762 = vst.msk [vmem:[#allocation2 + $0x58] sm:$0xff] %vm750_vm2, %v737_v44  ;;  %v509_v47 = vpop.xlane.xlu0 %508  ;;  %v1392_v48 = vpop.f32.mrf.mxu0  ;;  %v1671_v53 = vmax.f32 %v1621_v43, %v1623_v45 }
 0x1b2   : > { %532 = vst.msk [vmem:[#allocation2 + $0x60] sm:$0xff] %vm519_vm1, %v509_v47  ;;  %v1440_v27 = vmax.f32 %v1390_v26, %v1392_v48  ;;  %v1993_v49 = vpop.f32.mrf.mxu1 }
 0x1b3   : > { %v1762_v50 = vpop.f32.mrf.mxu0  ;;  %1438 = vmax.xlane.f32.xlu0 %v1437_v46 }
 0x1b4   : > { %1441 = vmax.xlane.f32.xlu1 %v1440_v27  ;;  %v512_v51 = vpop.xlane.xlu1 %511  ;;  %v1995_v52 = vpop.f32.mrf.mxu1 }
 0x1b5   : > { %v740_v28 = vpop.xlane.xlu0 %739  ;;  %533 = vst.msk [vmem:[#allocation2 + $0x68] sm:$0xff] %vm519_vm1, %v512_v51  ;;  %v1764_v54 = vpop.f32.mrf.mxu0  ;;  %v2088_v61 = vmax.f32 %v1993_v49, %v1995_v52 }
 0x1b6   : > { %763 = vst.msk [vmem:[#allocation2 + $0x60] sm:$0xff] %vm750_vm2, %v740_v28  ;;  %v1857_v55 = vmax.f32 %v1762_v50, %v1764_v54  ;;  %v1999_v56 = vpop.f32.mrf.mxu1 }
 0x1b7   : > { %v1768_v57 = vpop.f32.mrf.mxu0  ;;  %1672 = vmax.xlane.f32.xlu0 %v1671_v53 }
 0x1b8   : > { %1858 = vmax.xlane.f32.xlu1 %v1857_v55  ;;  %v743_v58 = vpop.xlane.xlu1 %742  ;;  %v2001_v29 = vpop.f32.mrf.mxu1 }
 0x1b9   : > { %764 = vst.msk [vmem:[#allocation2 + $0x68] sm:$0xff] %vm750_vm2, %v743_v58  ;;  %v515_v59 = vpop.xlane.xlu0 %514  ;;  %v1770_v60 = vpop.f32.mrf.mxu0  ;;  %v2091_v5 = vmax.f32 %v1999_v56, %v2001_v29 }
 0x1ba   : > { %534 = vst.msk [vmem:[#allocation2 + $0x70] sm:$0xff] %vm519_vm1, %v515_v59  ;;  %v1860_v62 = vmax.f32 %v1768_v57, %v1770_v60  ;;  %v2005_v63 = vpop.f32.mrf.mxu1 }
 0x1bb   : > { %v1774_v30 = vpop.f32.mrf.mxu0 }
 0x1bc   : > { %1861 = vmax.xlane.f32.xlu0 %v1860_v62  ;;  %2089 = vmax.xlane.f32.xlu1 %v2088_v61  ;;  %v518_v1 = vpop.xlane.xlu1 %517  ;;  %v2007_v2 = vpop.f32.mrf.mxu1 }
 0x1bd   : > { %v746_v3 = vpop.xlane.xlu0 %745  ;;  %v1776_v4 = vpop.f32.mrf.mxu0  ;;  %535 = vst.msk [vmem:[#allocation2 + $0x78] sm:$0xff] %vm519_vm1, %v518_v1  ;;  %v2094_v11 = vmax.f32 %v2005_v63, %v2007_v2 }
 0x1be   : > { %765 = vst.msk [vmem:[#allocation2 + $0x70] sm:$0xff] %vm750_vm2, %v746_v3  ;;  %v1863_v31 = vmax.f32 %v1774_v30, %v1776_v4  ;;  %v2011_v6 = vpop.f32.mrf.mxu1 }
 0x1bf   : > { %v1780_v7 = vpop.f32.mrf.mxu0 }
 0x1c0   : > { %2092 = vmax.xlane.f32.xlu0 %v2091_v5  ;;  %1864 = vmax.xlane.f32.xlu1 %v1863_v31  ;;  %v749_v8 = vpop.xlane.xlu1 %748  ;;  %v2013_v9 = vpop.f32.mrf.mxu1 }
 0x1c1   : > { %v935_v10 = vpop.xlane.xlu0 %934  ;;  %v1782_v32 = vpop.f32.mrf.mxu0  ;;  %766 = vst.msk [vmem:[#allocation2 + $0x78] sm:$0xff] %vm750_vm2, %v749_v8  ;;  %v2097_v18 = vmax.f32 %v2011_v6, %v2013_v9 }
 0x1c2   : > { %982 = vst.msk [vmem:[#allocation2] sm:$0xff] %vm981_vm3, %v935_v10  ;;  %v1866_v12 = vmax.f32 %v1780_v7, %v1782_v32  ;;  %v2017_v13 = vpop.f32.mrf.mxu1 }
 0x1c3   : > { %v1786_v14 = vpop.f32.mrf.mxu0 }
 0x1c4   : > { %1867 = vmax.xlane.f32.xlu0 %v1866_v12  ;;  %2095 = vmax.xlane.f32.xlu1 %v2094_v11  ;;  %v938_v15 = vpop.xlane.xlu1 %937  ;;  %v2019_v33 = vpop.f32.mrf.mxu1 }
 0x1c5   : > { %v1166_v16 = vpop.xlane.xlu0 %1165  ;;  %v1788_v17 = vpop.f32.mrf.mxu0  ;;  %983 = vst.msk [vmem:[#allocation2 + $0x8] sm:$0xff] %vm981_vm3, %v938_v15  ;;  %v2100_v35 = vmax.f32 %v2017_v13, %v2019_v33 }
 0x1c6   : > { %1213 = vst.msk [vmem:[#allocation2] sm:$0xff] %vm1212_vm4, %v1166_v16  ;;  %v1869_v19 = vmax.f32 %v1786_v14, %v1788_v17  ;;  %v2023_v20 = vpop.f32.mrf.mxu1 }
 0x1c7   : > { %v1792_v0 = vpop.f32.mrf.mxu0 }
 0x1c8   : > { %2098 = vmax.xlane.f32.xlu0 %v2097_v18  ;;  %1870 = vmax.xlane.f32.xlu1 %v1869_v19  ;;  %v1169_v21 = vpop.xlane.xlu1 %1168  ;;  %v2025_v22 = vpop.f32.mrf.mxu1 }
 0x1c9   : > { %v941_v23 = vpop.xlane.xlu0 %940  ;;  %v1794_v24 = vpop.f32.mrf.mxu0  ;;  %1214 = vst.msk [vmem:[#allocation2 + $0x8] sm:$0xff] %vm1212_vm4, %v1169_v21  ;;  %v2103_v41 = vmax.f32 %v2023_v20, %v2025_v22 }
 0x1ca   : > { %984 = vst.msk [vmem:[#allocation2 + $0x10] sm:$0xff] %vm981_vm3, %v941_v23  ;;  %v1872_v36 = vmax.f32 %v1792_v0, %v1794_v24  ;;  %v2029_v34 = vpop.f32.mrf.mxu1 }
 0x1cb   : > { %v1798_v37 = vpop.f32.mrf.mxu0 }
 0x1cc   : > { %1873 = vmax.xlane.f32.xlu0 %v1872_v36  ;;  %2101 = vmax.xlane.f32.xlu1 %v2100_v35  ;;  %v944_v38 = vpop.xlane.xlu1 %943  ;;  %v2031_v25 = vpop.f32.mrf.mxu1 }
 0x1cd   : > { %v1172_v39 = vpop.xlane.xlu0 %1171  ;;  %v1800_v40 = vpop.f32.mrf.mxu0  ;;  %985 = vst.msk [vmem:[#allocation2 + $0x18] sm:$0xff] %vm981_vm3, %v944_v38  ;;  %v2106_v48 = vmax.f32 %v2029_v34, %v2031_v25 }
 0x1ce   : > { %1215 = vst.msk [vmem:[#allocation2 + $0x10] sm:$0xff] %vm1212_vm4, %v1172_v39  ;;  %v1875_v42 = vmax.f32 %v1798_v37, %v1800_v40  ;;  %v2035_v43 = vpop.f32.mrf.mxu1 }
 0x1cf   : > { %v1804_v26 = vpop.f32.mrf.mxu0 }
 0x1d0   : > { %2104 = vmax.xlane.f32.xlu0 %v2103_v41  ;;  %1876 = vmax.xlane.f32.xlu1 %v1875_v42  ;;  %v1175_v44 = vpop.xlane.xlu1 %1174  ;;  %v2037_v45 = vpop.f32.mrf.mxu1 }
 0x1d1   : > { %v947_v46 = vpop.xlane.xlu0 %946  ;;  %v1806_v47 = vpop.f32.mrf.mxu0  ;;  %1216 = vst.msk [vmem:[#allocation2 + $0x18] sm:$0xff] %vm1212_vm4, %v1175_v44  ;;  %v2109_v54 = vmax.f32 %v2035_v43, %v2037_v45 }
 0x1d2   : > { %986 = vst.msk [vmem:[#allocation2 + $0x20] sm:$0xff] %vm981_vm3, %v947_v46  ;;  %v1878_v27 = vmax.f32 %v1804_v26, %v1806_v47  ;;  %v2041_v49 = vpop.f32.mrf.mxu1 }
 0x1d3   : > { %v1810_v50 = vpop.f32.mrf.mxu0 }
 0x1d4   : > { %1879 = vmax.xlane.f32.xlu0 %v1878_v27  ;;  %2107 = vmax.xlane.f32.xlu1 %v2106_v48  ;;  %v950_v51 = vpop.xlane.xlu1 %949  ;;  %v2043_v52 = vpop.f32.mrf.mxu1 }
 0x1d5   : > { %v1178_v53 = vpop.xlane.xlu0 %1177  ;;  %v1812_v28 = vpop.f32.mrf.mxu0  ;;  %987 = vst.msk [vmem:[#allocation2 + $0x28] sm:$0xff] %vm981_vm3, %v950_v51  ;;  %v2112_v61 = vmax.f32 %v2041_v49, %v2043_v52 }
 0x1d6   : > { %1217 = vst.msk [vmem:[#allocation2 + $0x20] sm:$0xff] %vm1212_vm4, %v1178_v53  ;;  %v1881_v55 = vmax.f32 %v1810_v50, %v1812_v28  ;;  %v2047_v56 = vpop.f32.mrf.mxu1 }
 0x1d7   : > { %v1816_v57 = vpop.f32.mrf.mxu0 }
 0x1d8   : > { %2110 = vmax.xlane.f32.xlu0 %v2109_v54  ;;  %1882 = vmax.xlane.f32.xlu1 %v1881_v55  ;;  %v1181_v58 = vpop.xlane.xlu1 %1180  ;;  %v2049_v29 = vpop.f32.mrf.mxu1 }
 0x1d9   : > { %v953_v59 = vpop.xlane.xlu0 %952  ;;  %v1818_v60 = vpop.f32.mrf.mxu0  ;;  %1218 = vst.msk [vmem:[#allocation2 + $0x28] sm:$0xff] %vm1212_vm4, %v1181_v58  ;;  %v2115_v5 = vmax.f32 %v2047_v56, %v2049_v29 }
 0x1da   : > { %988 = vst.msk [vmem:[#allocation2 + $0x30] sm:$0xff] %vm981_vm3, %v953_v59  ;;  %v1884_v62 = vmax.f32 %v1816_v57, %v1818_v60  ;;  %v2053_v63 = vpop.f32.mrf.mxu1 }
 0x1db   : > { %v1822_v30 = vpop.f32.mrf.mxu0 }
 0x1dc   : > { %1885 = vmax.xlane.f32.xlu0 %v1884_v62  ;;  %2113 = vmax.xlane.f32.xlu1 %v2112_v61  ;;  %v956_v1 = vpop.xlane.xlu1 %955  ;;  %v2055_v2 = vpop.f32.mrf.mxu1 }
 0x1dd   : > { %v1184_v3 = vpop.xlane.xlu0 %1183  ;;  %v1824_v4 = vpop.f32.mrf.mxu0  ;;  %989 = vst.msk [vmem:[#allocation2 + $0x38] sm:$0xff] %vm981_vm3, %v956_v1  ;;  %v2118_v11 = vmax.f32 %v2053_v63, %v2055_v2 }
 0x1de   : > { %1219 = vst.msk [vmem:[#allocation2 + $0x30] sm:$0xff] %vm1212_vm4, %v1184_v3  ;;  %v1887_v31 = vmax.f32 %v1822_v30, %v1824_v4  ;;  %v2059_v6 = vpop.f32.mrf.mxu1 }
 0x1df   : > { %v1828_v7 = vpop.f32.mrf.mxu0 }
 0x1e0   : > { %2116 = vmax.xlane.f32.xlu0 %v2115_v5  ;;  %1888 = vmax.xlane.f32.xlu1 %v1887_v31  ;;  %v1187_v8 = vpop.xlane.xlu1 %1186  ;;  %v2061_v9 = vpop.f32.mrf.mxu1 }
 0x1e1   : > { %v959_v10 = vpop.xlane.xlu0 %958  ;;  %v1830_v32 = vpop.f32.mrf.mxu0  ;;  %1220 = vst.msk [vmem:[#allocation2 + $0x38] sm:$0xff] %vm1212_vm4, %v1187_v8  ;;  %v2121_v18 = vmax.f32 %v2059_v6, %v2061_v9 }
 0x1e2   : > { %990 = vst.msk [vmem:[#allocation2 + $0x40] sm:$0xff] %vm981_vm3, %v959_v10  ;;  %v1890_v12 = vmax.f32 %v1828_v7, %v1830_v32  ;;  %v2065_v13 = vpop.f32.mrf.mxu1 }
 0x1e3   : > { %v1834_v14 = vpop.f32.mrf.mxu0 }
 0x1e4   : > { %1891 = vmax.xlane.f32.xlu0 %v1890_v12  ;;  %2119 = vmax.xlane.f32.xlu1 %v2118_v11  ;;  %v962_v15 = vpop.xlane.xlu1 %961  ;;  %v2067_v33 = vpop.f32.mrf.mxu1 }
 0x1e5   : > { %v1190_v16 = vpop.xlane.xlu0 %1189  ;;  %v1836_v17 = vpop.f32.mrf.mxu0  ;;  %991 = vst.msk [vmem:[#allocation2 + $0x48] sm:$0xff] %vm981_vm3, %v962_v15  ;;  %v2124_v35 = vmax.f32 %v2065_v13, %v2067_v33 }
 0x1e6   : > { %1221 = vst.msk [vmem:[#allocation2 + $0x40] sm:$0xff] %vm1212_vm4, %v1190_v16  ;;  %v1893_v19 = vmax.f32 %v1834_v14, %v1836_v17  ;;  %v2071_v20 = vpop.f32.mrf.mxu1 }
 0x1e7   : > { %v1840_v0 = vpop.f32.mrf.mxu0 }
 0x1e8   : > { %2122 = vmax.xlane.f32.xlu0 %v2121_v18  ;;  %1894 = vmax.xlane.f32.xlu1 %v1893_v19  ;;  %v1193_v21 = vpop.xlane.xlu1 %1192  ;;  %v2073_v22 = vpop.f32.mrf.mxu1 }
 0x1e9   : > { %v965_v23 = vpop.xlane.xlu0 %964  ;;  %v1842_v24 = vpop.f32.mrf.mxu0  ;;  %1222 = vst.msk [vmem:[#allocation2 + $0x48] sm:$0xff] %vm1212_vm4, %v1193_v21  ;;  %v2127_v41 = vmax.f32 %v2071_v20, %v2073_v22 }
 0x1ea   : > { %992 = vst.msk [vmem:[#allocation2 + $0x50] sm:$0xff] %vm981_vm3, %v965_v23  ;;  %v1896_v36 = vmax.f32 %v1840_v0, %v1842_v24  ;;  %v2077_v34 = vpop.f32.mrf.mxu1 }
 0x1eb   : > { %v1846_v37 = vpop.f32.mrf.mxu0 }
 0x1ec   : > { %1897 = vmax.xlane.f32.xlu0 %v1896_v36  ;;  %2125 = vmax.xlane.f32.xlu1 %v2124_v35  ;;  %v968_v38 = vpop.xlane.xlu1 %967  ;;  %v2079_v25 = vpop.f32.mrf.mxu1 }
 0x1ed   : > { %v1196_v39 = vpop.xlane.xlu0 %1195  ;;  %v1848_v40 = vpop.f32.mrf.mxu0  ;;  %993 = vst.msk [vmem:[#allocation2 + $0x58] sm:$0xff] %vm981_vm3, %v968_v38  ;;  %v2130_v47 = vmax.f32 %v2077_v34, %v2079_v25 }
 0x1ee   : > { %1223 = vst.msk [vmem:[#allocation2 + $0x50] sm:$0xff] %vm1212_vm4, %v1196_v39  ;;  %v1899_v42 = vmax.f32 %v1846_v37, %v1848_v40  ;;  %v2083_v26 = vpop.f32.mrf.mxu1 }
 0x1ef   : > { %v1852_v43 = vpop.f32.mrf.mxu0 }
 0x1f0   : > { %2128 = vmax.xlane.f32.xlu0 %v2127_v41  ;;  %1900 = vmax.xlane.f32.xlu1 %v1899_v42  ;;  %v1199_v44 = vpop.xlane.xlu1 %1198  ;;  %v2085_v27 = vpop.f32.mrf.mxu1 }
 0x1f1   : > { %v971_v45 = vpop.xlane.xlu0 %970  ;;  %1224 = vst.msk [vmem:[#allocation2 + $0x58] sm:$0xff] %vm1212_vm4, %v1199_v44  ;;  %v1854_v46 = vpop.f32.mrf.mxu0  ;;  %v2133_v51 = vmax.f32 %v2083_v26, %v2085_v27 }
 0x1f2   : > { %994 = vst.msk [vmem:[#allocation2 + $0x60] sm:$0xff] %vm981_vm3, %v971_v45  ;;  %v1902_v48 = vmax.f32 %v1852_v43, %v1854_v46 }
 0x1f4   : > { %2131 = vmax.xlane.f32.xlu1 %v2130_v47  ;;  %v974_v49 = vpop.xlane.xlu1 %973  ;;  %1903 = vmax.xlane.f32.xlu0 %v1902_v48 }
 0x1f5   : > { %v1202_v50 = vpop.xlane.xlu0 %1201  ;;  %995 = vst.msk [vmem:[#allocation2 + $0x68] sm:$0xff] %vm981_vm3, %v974_v49 }
 0x1f6   : > { %1225 = vst.msk [vmem:[#allocation2 + $0x60] sm:$0xff] %vm1212_vm4, %v1202_v50 }
 0x1f8   : > { %2134 = vmax.xlane.f32.xlu1 %v2133_v51  ;;  %v1205_v52 = vpop.xlane.xlu1 %1204 }
 0x1f9   : > { %v977_v53 = vpop.xlane.xlu0 %976  ;;  %1226 = vst.msk [vmem:[#allocation2 + $0x68] sm:$0xff] %vm1212_vm4, %v1205_v52 }
 0x1fa   : > { %996 = vst.msk [vmem:[#allocation2 + $0x70] sm:$0xff] %vm981_vm3, %v977_v53 }
 0x1fc   : > { %v980_v28 = vpop.xlane.xlu1 %979 }
 0x1fd   : > { %v1208_v54 = vpop.xlane.xlu0 %1207  ;;  %997 = vst.msk [vmem:[#allocation2 + $0x78] sm:$0xff] %vm981_vm3, %v980_v28 }
 0x1fe   : > { %1227 = vst.msk [vmem:[#allocation2 + $0x70] sm:$0xff] %vm1212_vm4, %v1208_v54 }
 0x200   : > { %v1211_v55 = vpop.xlane.xlu1 %1210 }
 0x201   : > { %v1397_v56 = vpop.xlane.xlu0 %1396  ;;  %1228 = vst.msk [vmem:[#allocation2 + $0x78] sm:$0xff] %vm1212_vm4, %v1211_v55 }
 0x202   : > { %1444 = vst.msk [vmem:[#allocation2] sm:$0xff] %vm1443_vm5, %v1397_v56 }
 0x204   : > { %v1400_v57 = vpop.xlane.xlu1 %1399 }
 0x205   : > { %v1628_v58 = vpop.xlane.xlu0 %1627  ;;  %1445 = vst.msk [vmem:[#allocation2 + $0x8] sm:$0xff] %vm1443_vm5, %v1400_v57 }
 0x206   : > { %1675 = vst.msk [vmem:[#allocation2] sm:$0xff] %vm1674_vm6, %v1628_v58 }
 0x208   : > { %v1634_v29 = vpop.xlane.xlu1 %1633 }
 0x209   : > { %v1631_v59 = vpop.xlane.xlu0 %1630 }
 0x20a   : > { %1676 = vst.msk [vmem:[#allocation2 + $0x8] sm:$0xff] %vm1674_vm6, %v1631_v59 }
 0x20d   : > { %v1403_v60 = vpop.xlane.xlu0 %1402  ;;  %v1406_v61 = vpop.xlane.xlu1 %1405 }
 0x20e   : > { %1446 = vst.msk [vmem:[#allocation2 + $0x10] sm:$0xff] %vm1443_vm5, %v1403_v60  ;;  %1447 = vst.msk [vmem:[#allocation2 + $0x18] sm:$0xff] %vm1443_vm5, %v1406_v61 }
 0x20f   : > { %1677 = vst.msk [vmem:[#allocation2 + $0x10] sm:$0xff] %vm1674_vm6, %v1634_v29 }
 0x211   : > { %v1637_v62 = vpop.xlane.xlu0 %1636  ;;  %v1640_v63 = vpop.xlane.xlu1 %1639 }
 0x212   : > { %1678 = vst.msk [vmem:[#allocation2 + $0x18] sm:$0xff] %vm1674_vm6, %v1637_v62 }
 0x215   : > { %v1409_v30 = vpop.xlane.xlu0 %1408  ;;  %v1412_v1 = vpop.xlane.xlu1 %1411 }
 0x216   : > { %1448 = vst.msk [vmem:[#allocation2 + $0x20] sm:$0xff] %vm1443_vm5, %v1409_v30  ;;  %1449 = vst.msk [vmem:[#allocation2 + $0x28] sm:$0xff] %vm1443_vm5, %v1412_v1 }
 0x217   : > { %1679 = vst.msk [vmem:[#allocation2 + $0x20] sm:$0xff] %vm1674_vm6, %v1640_v63 }
 0x219   : > { %v1643_v2 = vpop.xlane.xlu0 %1642  ;;  %v1646_v3 = vpop.xlane.xlu1 %1645 }
 0x21a   : > { %1680 = vst.msk [vmem:[#allocation2 + $0x28] sm:$0xff] %vm1674_vm6, %v1643_v2 }
 0x21d   : > { %v1415_v4 = vpop.xlane.xlu0 %1414  ;;  %v1418_v5 = vpop.xlane.xlu1 %1417 }
 0x21e   : > { %1450 = vst.msk [vmem:[#allocation2 + $0x30] sm:$0xff] %vm1443_vm5, %v1415_v4  ;;  %1451 = vst.msk [vmem:[#allocation2 + $0x38] sm:$0xff] %vm1443_vm5, %v1418_v5 }
 0x21f   : > { %1681 = vst.msk [vmem:[#allocation2 + $0x30] sm:$0xff] %vm1674_vm6, %v1646_v3 }
 0x221   : > { %v1649_v31 = vpop.xlane.xlu0 %1648  ;;  %v1652_v6 = vpop.xlane.xlu1 %1651 }
 0x222   : > { %1682 = vst.msk [vmem:[#allocation2 + $0x38] sm:$0xff] %vm1674_vm6, %v1649_v31 }
 0x225   : > { %v1421_v7 = vpop.xlane.xlu0 %1420  ;;  %v1424_v8 = vpop.xlane.xlu1 %1423 }
 0x226   : > { %1452 = vst.msk [vmem:[#allocation2 + $0x40] sm:$0xff] %vm1443_vm5, %v1421_v7  ;;  %1453 = vst.msk [vmem:[#allocation2 + $0x48] sm:$0xff] %vm1443_vm5, %v1424_v8 }
 0x227   : > { %1683 = vst.msk [vmem:[#allocation2 + $0x40] sm:$0xff] %vm1674_vm6, %v1652_v6  ;;  %v2501_v6 = vld [vmem:[%s3472_s2] ss:$0 sm:$0xff] }
 0x229   : > { %v1655_v9 = vpop.xlane.xlu0 %1654  ;;  %v1658_v10 = vpop.xlane.xlu1 %1657 }
 0x22a   : > { %1684 = vst.msk [vmem:[#allocation2 + $0x48] sm:$0xff] %vm1674_vm6, %v1655_v9 }
 0x22d   : > { %v1427_v32 = vpop.xlane.xlu0 %1426  ;;  %v1430_v11 = vpop.xlane.xlu1 %1429 }
 0x22e   : > { %1454 = vst.msk [vmem:[#allocation2 + $0x50] sm:$0xff] %vm1443_vm5, %v1427_v32  ;;  %1455 = vst.msk [vmem:[#allocation2 + $0x58] sm:$0xff] %vm1443_vm5, %v1430_v11 }
 0x22f   : > { %1685 = vst.msk [vmem:[#allocation2 + $0x50] sm:$0xff] %vm1674_vm6, %v1658_v10 }
 0x231   : > { %v1661_v12 = vpop.xlane.xlu0 %1660  ;;  %v1664_v13 = vpop.xlane.xlu1 %1663 }
 0x232   : > { %1686 = vst.msk [vmem:[#allocation2 + $0x58] sm:$0xff] %vm1674_vm6, %v1661_v12 }
 0x235   : > { %v1433_v14 = vpop.xlane.xlu0 %1432  ;;  %v1436_v15 = vpop.xlane.xlu1 %1435 }
 0x236   : > { %1456 = vst.msk [vmem:[#allocation2 + $0x60] sm:$0xff] %vm1443_vm5, %v1433_v14  ;;  %1457 = vst.msk [vmem:[#allocation2 + $0x68] sm:$0xff] %vm1443_vm5, %v1436_v15 }
 0x237   : > { %1687 = vst.msk [vmem:[#allocation2 + $0x60] sm:$0xff] %vm1674_vm6, %v1664_v13 }
 0x239   : > { %v1667_v33 = vpop.xlane.xlu0 %1666  ;;  %v1670_v16 = vpop.xlane.xlu1 %1669 }
 0x23a   : > { %1688 = vst.msk [vmem:[#allocation2 + $0x68] sm:$0xff] %vm1674_vm6, %v1667_v33 }
 0x23d   : > { %v1439_v17 = vpop.xlane.xlu0 %1438  ;;  %v1442_v18 = vpop.xlane.xlu1 %1441 }
 0x23e   : > { %1458 = vst.msk [vmem:[#allocation2 + $0x70] sm:$0xff] %vm1443_vm5, %v1439_v17  ;;  %1459 = vst.msk [vmem:[#allocation2 + $0x78] sm:$0xff] %vm1443_vm5, %v1442_v18 }
 0x23f   : > { %1689 = vst.msk [vmem:[#allocation2 + $0x70] sm:$0xff] %vm1674_vm6, %v1670_v16 }
 0x241   : > { %v1673_v19 = vpop.xlane.xlu0 %1672  ;;  %v1859_v20 = vpop.xlane.xlu1 %1858 }
 0x242   : > { %1690 = vst.msk [vmem:[#allocation2 + $0x78] sm:$0xff] %vm1674_vm6, %v1673_v19 }
 0x243   : > { %1906 = vst.msk [vmem:[#allocation2] sm:$0xff] %vm1905_vm7, %v1859_v20 }
 0x245   : > { %v1862_v0 = vpop.xlane.xlu0 %1861  ;;  %v2090_v21 = vpop.xlane.xlu1 %2089 }
 0x246   : > { %1907 = vst.msk [vmem:[#allocation2 + $0x8] sm:$0xff] %vm1905_vm7, %v1862_v0 }
 0x247   : > { %2137 = vst.msk [vmem:[#allocation2] sm:$0xff] %vm2136_vm8, %v2090_v21 }
 0x249   : > { %v2093_v22 = vpop.xlane.xlu0 %2092  ;;  %v1865_v23 = vpop.xlane.xlu1 %1864 }
 0x24a   : > { %2138 = vst.msk [vmem:[#allocation2 + $0x8] sm:$0xff] %vm2136_vm8, %v2093_v22 }
 0x24b   : > { %1908 = vst.msk [vmem:[#allocation2 + $0x10] sm:$0xff] %vm1905_vm7, %v1865_v23 }
 0x24d   : > { %v1868_v24 = vpop.xlane.xlu0 %1867  ;;  %v2096_v35 = vpop.xlane.xlu1 %2095 }
 0x24e   : > { %v2153_v36 = vld [vmem:[#allocation2] sm:$0xff]  ;;  %1909 = vst.msk [vmem:[#allocation2 + $0x18] sm:$0xff] %vm1905_vm7, %v1868_v24 }
 0x24f   : > { %2139 = vst.msk [vmem:[#allocation2 + $0x10] sm:$0xff] %vm2136_vm8, %v2096_v35  ;;  %2169 = vxpose.xlu0.b32.start [1/16] (narrow) %v2153_v36, 8 }
 0x251   : > { %v2099_v34 = vpop.xlane.xlu0 %2098  ;;  %v1871_v37 = vpop.xlane.xlu1 %1870  ;;  %v2154_v38 = vld [vmem:[#allocation2 + $0x8] sm:$0xff] }
 0x252   : > { %2140 = vst.msk [vmem:[#allocation2 + $0x18] sm:$0xff] %vm2136_vm8, %v2099_v34 }
 0x253   : > { %1910 = vst.msk [vmem:[#allocation2 + $0x20] sm:$0xff] %vm1905_vm7, %v1871_v37  ;;  %2170 = vxpose.xlu0.b32.cont [2/16] (narrow) %v2154_v38, 8 }
 0x255   : > { %v1874_v25 = vpop.xlane.xlu0 %1873  ;;  %v2102_v39 = vpop.xlane.xlu1 %2101 }
 0x256   : > { %v2155_v40 = vld [vmem:[#allocation2 + $0x10] sm:$0xff]  ;;  %1911 = vst.msk [vmem:[#allocation2 + $0x28] sm:$0xff] %vm1905_vm7, %v1874_v25 }
 0x257   : > { %2141 = vst.msk [vmem:[#allocation2 + $0x20] sm:$0xff] %vm2136_vm8, %v2102_v39  ;;  %2171 = vxpose.xlu0.b32.cont [3/16] (narrow) %v2155_v40, 8 }
 0x259   : > { %v2105_v41 = vpop.xlane.xlu0 %2104  ;;  %v1877_v42 = vpop.xlane.xlu1 %1876  ;;  %v2156_v43 = vld [vmem:[#allocation2 + $0x18] sm:$0xff] }
 0x25a   : > { %2142 = vst.msk [vmem:[#allocation2 + $0x28] sm:$0xff] %vm2136_vm8, %v2105_v41 }
 0x25b   : > { %1912 = vst.msk [vmem:[#allocation2 + $0x30] sm:$0xff] %vm1905_vm7, %v1877_v42  ;;  %2172 = vxpose.xlu0.b32.cont [4/16] (narrow) %v2156_v43, 8 }
 0x25d   : > { %v1880_v26 = vpop.xlane.xlu0 %1879  ;;  %v2108_v44 = vpop.xlane.xlu1 %2107 }
 0x25e   : > { %v2157_v45 = vld [vmem:[#allocation2 + $0x20] sm:$0xff]  ;;  %1913 = vst.msk [vmem:[#allocation2 + $0x38] sm:$0xff] %vm1905_vm7, %v1880_v26 }
 0x25f   : > { %2143 = vst.msk [vmem:[#allocation2 + $0x30] sm:$0xff] %vm2136_vm8, %v2108_v44  ;;  %2173 = vxpose.xlu0.b32.cont [5/16] (narrow) %v2157_v45, 8 }
 0x261   : > { %v2111_v46 = vpop.xlane.xlu0 %2110  ;;  %v1883_v47 = vpop.xlane.xlu1 %1882  ;;  %v2158_v48 = vld [vmem:[#allocation2 + $0x28] sm:$0xff] }
 0x262   : > { %2144 = vst.msk [vmem:[#allocation2 + $0x38] sm:$0xff] %vm2136_vm8, %v2111_v46 }
 0x263   : > { %1914 = vst.msk [vmem:[#allocation2 + $0x40] sm:$0xff] %vm1905_vm7, %v1883_v47  ;;  %2174 = vxpose.xlu0.b32.cont [6/16] (narrow) %v2158_v48, 8 }
 0x265   : > { %v1886_v27 = vpop.xlane.xlu0 %1885  ;;  %v2114_v49 = vpop.xlane.xlu1 %2113 }
 0x266   : > { %v2159_v50 = vld [vmem:[#allocation2 + $0x30] sm:$0xff]  ;;  %1915 = vst.msk [vmem:[#allocation2 + $0x48] sm:$0xff] %vm1905_vm7, %v1886_v27 }
 0x267   : > { %2145 = vst.msk [vmem:[#allocation2 + $0x40] sm:$0xff] %vm2136_vm8, %v2114_v49  ;;  %2175 = vxpose.xlu0.b32.cont [7/16] (narrow) %v2159_v50, 8 }
 0x269   : > { %v2117_v51 = vpop.xlane.xlu0 %2116  ;;  %v1889_v52 = vpop.xlane.xlu1 %1888  ;;  %v2160_v53 = vld [vmem:[#allocation2 + $0x38] sm:$0xff] }
 0x26a   : > { %2146 = vst.msk [vmem:[#allocation2 + $0x48] sm:$0xff] %vm2136_vm8, %v2117_v51 }
 0x26b   : > { %1916 = vst.msk [vmem:[#allocation2 + $0x50] sm:$0xff] %vm1905_vm7, %v1889_v52  ;;  %2176 = vxpose.xlu0.b32.cont [8/16] (narrow) %v2160_v53, 8 }
 0x26d   : > { %v1892_v28 = vpop.xlane.xlu0 %1891  ;;  %v2120_v54 = vpop.xlane.xlu1 %2119 }
 0x26e   : > { %v2161_v55 = vld [vmem:[#allocation2 + $0x40] sm:$0xff]  ;;  %1917 = vst.msk [vmem:[#allocation2 + $0x58] sm:$0xff] %vm1905_vm7, %v1892_v28 }
 0x26f   : > { %2147 = vst.msk [vmem:[#allocation2 + $0x50] sm:$0xff] %vm2136_vm8, %v2120_v54  ;;  %2177 = vxpose.xlu0.b32.cont [9/16] (narrow) %v2161_v55, 8 }
 0x271   : > { %v2123_v56 = vpop.xlane.xlu0 %2122  ;;  %v1895_v57 = vpop.xlane.xlu1 %1894  ;;  %v2162_v58 = vld [vmem:[#allocation2 + $0x48] sm:$0xff] }
 0x272   : > { %2148 = vst.msk [vmem:[#allocation2 + $0x58] sm:$0xff] %vm2136_vm8, %v2123_v56 }
 0x273   : > { %1918 = vst.msk [vmem:[#allocation2 + $0x60] sm:$0xff] %vm1905_vm7, %v1895_v57  ;;  %2178 = vxpose.xlu0.b32.cont [10/16] (narrow) %v2162_v58, 8 }
 0x275   : > { %v1898_v29 = vpop.xlane.xlu0 %1897  ;;  %v2126_v59 = vpop.xlane.xlu1 %2125 }
 0x276   : > { %v2163_v60 = vld [vmem:[#allocation2 + $0x50] sm:$0xff]  ;;  %1919 = vst.msk [vmem:[#allocation2 + $0x68] sm:$0xff] %vm1905_vm7, %v1898_v29 }
 0x277   : > { %2149 = vst.msk [vmem:[#allocation2 + $0x60] sm:$0xff] %vm2136_vm8, %v2126_v59  ;;  %2179 = vxpose.xlu0.b32.cont [11/16] (narrow) %v2163_v60, 8 }
 0x279   : > { %v2129_v61 = vpop.xlane.xlu0 %2128  ;;  %v1901_v62 = vpop.xlane.xlu1 %1900  ;;  %v2164_v63 = vld [vmem:[#allocation2 + $0x58] sm:$0xff] }
 0x27a   : > { %2150 = vst.msk [vmem:[#allocation2 + $0x68] sm:$0xff] %vm2136_vm8, %v2129_v61 }
 0x27b   : > { %1920 = vst.msk [vmem:[#allocation2 + $0x70] sm:$0xff] %vm1905_vm7, %v1901_v62  ;;  %2180 = vxpose.xlu0.b32.cont [12/16] (narrow) %v2164_v63, 8 }
 0x27d   : > { %v2132_v30 = vpop.xlane.xlu1 %2131  ;;  %v1904_v2 = vpop.xlane.xlu0 %1903 }
 0x27e   : > { %v2165_v1 = vld [vmem:[#allocation2 + $0x60] sm:$0xff]  ;;  %2151 = vst.msk [vmem:[#allocation2 + $0x70] sm:$0xff] %vm2136_vm8, %v2132_v30 }
 0x27f   : > { %2181 = vxpose.xlu0.b32.cont [13/16] (narrow) %v2165_v1, 8  ;;  %1921 = vst.msk [vmem:[#allocation2 + $0x78] sm:$0xff] %vm1905_vm7, %v1904_v2 }
 0x281   : > { %v2135_v3 = vpop.xlane.xlu1 %2134  ;;  %v2166_v4 = vld [vmem:[#allocation2 + $0x68] sm:$0xff] }
 0x282   : > { %2152 = vst.msk [vmem:[#allocation2 + $0x78] sm:$0xff] %vm2136_vm8, %v2135_v3 }
 0x283   : > { %2182 = vxpose.xlu0.b32.cont [14/16] (narrow) %v2166_v4, 8 }
 0x285   : > { %v2167_v5 = vld [vmem:[#allocation2 + $0x70] sm:$0xff] }
 0x287   : > { %2183 = vxpose.xlu0.b32.cont [15/16] (narrow) %v2167_v5, 8 }
 0x289   : > { %v2168_v31 = vld [vmem:[#allocation2 + $0x78] sm:$0xff] }
 0x28b   : > { %2184 = vxpose.xlu0.b32.end [16/16] (narrow) %v2168_v31, 8 }
 0x2cb   : > { %v2185_v7 = vpop.trf.xlu0 }
 0x2cc   : > { %v2208_v8 = vadd.f32 %v2501_v6, %v2185_v7 }
 0x2ce   : > { %v2209_v9 = vmax.f32 %v2208_v8, 0.0 }
 0x2d0   : > { %2210 = vst [vmem:[%s230_s9] sm:$0xff] %v2209_v9 }
 0x2d1   : > { %2614 = shalt.err (!%p2611_p6)
}
 0x2d2   : > { %s2615_s30 = scalar_lea.hbm %s2224_s19, 128  ;;  %s2619_s5 = scalar_lea.hbm %s3473_s3, 256 }
 0x2d3   : > { %p2616_p7 = scmp.ne.s32.totalorder %s2224_s19, %s2615_s30  ;;  %p2620_p13 = scmp.lt.s32.totalorder %s2224_s19, %s3473_s3 }
 0x2d4   : > { %p2621_p2 = scmp.lt.s32.totalorder %s2619_s5, %s2615_s30 }
 0x2d5   : > { %p2617_p10 = pnand %p2616_p7, %p2759_p9 }
 0x2d6   : > { %p2622_p8 = por %p2621_p2, %p2620_p13 }
 0x2d7   : > { %p2618_p4 = pneg %p2617_p10 }
 0x2d9   : > { %p2623_p12 = pnand %p2622_p8, %p2618_p4 }
 0x2db   : > { %2626 = shalt.err (!%p2623_p12)
}
 0x2dc   : > { %2510 = dma.vmem_to_hbm [thread:$0]  (%p2759_p9), %s2227_s10, 128, %s2224_s19, %s2212_s21  }
 0x2dd PF: > { %s2238_s7 = sand.u32 1, %s2661_s12   ;;  %p3479_p0 = scmp.ge.s32.totalorder %s2681_s17, 2 }
 0x2de   : > { %s2239_s8 = scalar_lea.sflag [#allocation5], %s2238_s7 }
 0x2df   : > { %p2517_p1 = pnand %p3479_p0, %p2766_p11 }
 0x2e1   : > { %p2518_p3 = pneg %p2517_p1 }
 0x2e3   : > { %2656 = dma.done.wait (%p2518_p3), %s2239_s8, 128  }
 0x2e4   : > { %2658 = vsyncadd (%p2518_p3), %s2239_s8, 4294967168  ;;  %s19_s17 = sadd.s32 1, %s2681_s17   ;;  %s3480_s12 = smov %s2665_s13 }
 0x2e5   : > { %p16_p5 = scmp.ge.s32.totalorder %s19_s17, 4   ;;  %s3481_s13 = smov %s2669_s14 }
 0x2e6   : > { %s3482_s14 = smov %s2764_s26  ;;  %s3483_s15 = smov %s2677_s16 }
 0x2e7   : > { %s3484_s16 = smov %s3486_s20  ;;  %18 = sbr.rel (!%p16_p5) target bundleno = 6 (0x6), region = 90 }
 0x2ec   :  { %2244 = vsyncpa [#allocation4], 1 }
 0x2ed   :  { %2246 = vsyncpa [#allocation4 + $0x1], 1 }
 0x2ee   :  { %2247 = vsyncpa [#allocation5], 1 }
 0x2ef   :  { %2249 = vsyncpa [#allocation5 + $0x1], 1 }

</bundles_post_ra>
